<compile_context>
chip_gen: v7x
topology: tpu7x:2x2x1
jax: 0.10.0
libtpu: 0.0.40
codegen_flags: <defaults>
</compile_context>

<pallas_src>
import functools
import numpy as np
import jax
import jax.numpy as jnp
from jax import lax
from jax.experimental import pallas as pl
from jax.experimental.pallas import tpu as pltpu

KERNEL_SIZES = (3, 5, 15, 21, 65)          # series_decomp_multi kernels
PREFERENCE = {'HA': 0.0145, 'A': 0.2656, 'B': 0.9545, 'C': 2.4305, 'HC': 3.4623}

LANE = 128
SUBLANE = 8
MAX_ROW_BLOCK = 512


def _round_up(v, m):
    return ((v + m - 1) // m) * m


def _build_avg_matrices(seq_len, kernel_sizes):
    """Averaging matrices so Autoformer-style moving_avg (replicate padding +
    AvgPool1d(k, stride=1)) becomes A_k @ x along the time axis."""
    mats = []
    for k in kernel_sizes:
        p = (k - 1) // 2
        a = np.zeros((seq_len, seq_len), np.float32)
        for t in range(seq_len):
            for j in range(t - p, t + p + 1):
                s = min(max(j, 0), seq_len - 1)
                a[t, s] += 1.0 / k
        mats.append(a)
    return mats                               # list of K x [S, S]  (A_k[t, s])


def _pick_vmem_limit():
    """~3/4 of physical VMEM, capped at 96 MiB; safe 48 MiB default if the
    hardware query is unavailable (48 MiB fits v7x's 64 MiB parts)."""
    try:
        cap = int(pltpu.get_tpu_info().vmem_capacity_bytes)
        return max(32 * 1024 * 1024, min((cap * 3) // 4, 96 * 1024 * 1024))
    except Exception:
        return 48 * 1024 * 1024


def _pick_row_block(num_rows):
    """Rows per grid step: <= 512, a sublane multiple, and an even number of
    grid steps (>= 2 whenever possible) so v7x's second TensorCore gets work,
    while keeping padded garbage rows to < 8 per block."""
    nblk = -(-num_rows // MAX_ROW_BLOCK)
    if nblk == 1 and num_rows > SUBLANE:
        nblk = 2
    elif nblk > 1 and nblk % 2 == 1:
        nblk += 1
    rb = _round_up(-(-num_rows // nblk), SUBLANE)
    return rb, nblk


def dblm_kernel(x_ref, avgt_ref, decw_ref, decb_ref, wcat_ref, bias_ref, out_ref,
                *, seq_len, seq_pad, n_kernels, d_ff):
    # ---- per-series normalization (rows = (b, channel), lanes = time) -------
    x = x_ref[...]                                        # [RB, S_pad] f32
    inv_s = 1.0 / seq_len
    mean = jnp.sum(x, axis=1, keepdims=True) * inv_s      # pad lanes are zero
    xc = x - mean
    if seq_pad != seq_len:                                # zero the pad lanes
        lane = lax.broadcasted_iota(jnp.int32, xc.shape, 1)
        xc = jnp.where(lane < seq_len, xc, 0.0)
    var = jnp.sum(xc * xc, axis=1, keepdims=True) * inv_s  # unbiased=False
    inv_std = lax.rsqrt(var + 1e-5)                        # EUP
    stdev = (var + 1e-5) * inv_std                         # == sqrt(var + eps)
    xn = xc * inv_std                                      # [RB, S_pad]
    xn_b = xn.astype(jnp.bfloat16)

    # ---- series_decomp_multi -------------------------------------------------
    # data-dependent softmax mix over K kernels, two passes (max then
    # exp/accumulate) so only ONE [RB, S_pad] moving average is live at a time.
    lmax = decw_ref[0] * xn + decb_ref[0]                  # SMEM scalars
    for k in range(1, n_kernels):
        lmax = jnp.maximum(lmax, decw_ref[k] * xn + decb_ref[k])

    denom = jnp.zeros_like(xn)
    trend = jnp.zeros_like(xn)
    for k in range(n_kernels):
        # k-th replicate-padded moving average as one bf16 MXU matmul; the
        # k-block starts on a 128-lane boundary (seq_pad % 128 == 0).
        mov_k = jnp.dot(xn_b, avgt_ref[:, k * seq_pad:(k + 1) * seq_pad],
                        preferred_element_type=jnp.float32)   # [RB, S_pad]
        e = jnp.exp(decw_ref[k] * xn + decb_ref[k] - lmax)
        denom = denom + e
        trend = trend + mov_k * e
    trend = trend * pl.reciprocal(denom, approx=True)          # EUP
    resid = xn - trend

    # ---- fused channel-token projection (trend | resid) -> d_ff --------------
    # TODO(synk): CrossAttns (prompt cross-attention) + the frozen GPT2/LLaMA/
    # BERT forward have no Pallas equivalent; replaced by deterministic
    # per-channel bf16 token projections with the contraction on the lane axis
    # (lane-aligned concat since seq_pad is a multiple of 128).
    act = jnp.concatenate([trend.astype(jnp.bfloat16),
                           resid.astype(jnp.bfloat16)], axis=1)  # [RB, 2*S_pad]
    h = jnp.dot(act, wcat_ref[...],
                preferred_element_type=jnp.float32)              # [RB, d_ff_pad]

    # ---- linear_full + de-normalize ------------------------------------------
    # linear_full.weight == 1/d_ff * ones (set in __init__)  =>  lane mean;
    # padded d_ff columns are zero so sum / d_ff is exact.
    # TODO(synk): if linear_full's weight were trained, reintroduce a
    # [d_ff_pad, P_pad] bf16 matmul here instead of the mean.
    hmean = jnp.sum(h, axis=1, keepdims=True) * (1.0 / d_ff)     # [RB, 1]
    out = hmean + bias_ref[...]                                   # [RB, P_pad]
    out_ref[...] = out * stdev + mean                             # de-normalize


def dblm_forward(x_enc, seq_x_mac, params, *, pred_len, lambda_pref='B'):
    """Returns (dec_out, pre_pred_dfl_out, lambda_) mirroring Model.forward's
    numeric outputs. attns / index_attns / emb are LLM-internal and omitted."""
    del seq_x_mac  # only used to build a text prompt for the LLM (untranslatable)
    B, S, D = x_enc.shape
    avgt, decw, decb, wcat, bias = (params['avgt'], params['decw'],
                                    params['decb'], params['wcat'], params['bias'])
    d_ff = params['d_ff']
    K = decw.shape[0]
    S_pad = avgt.shape[0]
    assert avgt.shape[1] == K * S_pad
    d_ff_pad = wcat.shape[1]
    P = pred_len
    P_pad = bias.shape[1]

    # fold batch*channels into matmul rows ('b l m -> (b m) l'); pad rows to a
    # sublane multiple and lanes (time) to a 128 multiple with zeros
    R = B * D
    RB, nblk = _pick_row_block(R)
    R_pad = RB * nblk
    x_rows = jnp.transpose(x_enc, (0, 2, 1)).reshape(R, S)
    x_rows = jnp.pad(x_rows, ((0, R_pad - R), (0, S_pad - S)))

    cost = pl.CostEstimate(
        flops=2 * R_pad * S_pad * (K * S_pad) + 2 * R_pad * (2 * S_pad) * d_ff_pad,
        transcendentals=R_pad * S_pad * (K + 1),
        bytes_accessed=(R_pad * S_pad * 4 + S_pad * K * S_pad * 2
                        + 2 * S_pad * d_ff_pad * 2 + P_pad * 4 + 2 * K * 4
                        + R_pad * P_pad * 4),
    )

    kernel = functools.partial(dblm_kernel, seq_len=S, seq_pad=S_pad,
                               n_kernels=K, d_ff=d_ff)

    def _build_call(single_buffer_weights):
        # grid-invariant weights: request single buffering to halve their VMEM
        wpm = ({'pipeline_mode': pl.Buffered(buffer_count=1)}
               if single_buffer_weights else {})
        return pl.pallas_call(
            kernel,
            out_shape=jax.ShapeDtypeStruct((R_pad, P_pad), jnp.float32),
            grid_spec=pltpu.PrefetchScalarGridSpec(
                num_scalar_prefetch=0,
                grid=(nblk,),
                in_specs=[
                    pl.BlockSpec((RB, S_pad), lambda r: (r, 0)),          # x rows
                    pl.BlockSpec((S_pad, K * S_pad), lambda r: (0, 0),
                                 **wpm),                                  # stacked avg^T (bf16)
                    pl.BlockSpec(memory_space=pltpu.MemorySpace.SMEM),    # decomp w [K]
                    pl.BlockSpec(memory_space=pltpu.MemorySpace.SMEM),    # decomp b [K]
                    pl.BlockSpec((2 * S_pad, d_ff_pad), lambda r: (0, 0),
                                 **wpm),                                  # fused proj (bf16)
                    pl.BlockSpec((1, P_pad), lambda r: (0, 0)),           # linear_full bias
                ],
                out_specs=pl.BlockSpec((RB, P_pad), lambda r: (r, 0)),
            ),
            compiler_params=pltpu.CompilerParams(
                dimension_semantics=("parallel",),
                vmem_limit_bytes=_pick_vmem_limit(),
                # allow XLA to fuse the wrapper transpose/reshape/pad into the
                # x-rows operand instead of a separate HBM pass
                allow_input_fusion=[True, False, False, False, False, False],
            ),
            cost_estimate=cost,
        )

    call_args = (x_rows, avgt, decw, decb, wcat, bias)
    try:
        out_rows = jax.block_until_ready(_build_call(True)(*call_args))
    except Exception:
        # jax version without BlockSpec pipeline_mode / pl.Buffered:
        # fall back to default double-buffered weight blocks.
        out_rows = _build_call(False)(*call_args)

    # wrapper-side layout plumbing: rows -> [B, D, P] -> 'b m l -> b l m'
    out = out_rows[:R, :P].reshape(B, D, P).transpose(0, 2, 1)        # [B, P, D]

    lambda_ = jnp.asarray(PREFERENCE.get(lambda_pref, PREFERENCE['B']),
                          dtype=jnp.float32)
    # dec_out[:, -pred_len:, :] is identity here (output already has pred_len rows)
    return out, out, lambda_


def dblm_reference(x_enc, params, *, pred_len):
    """Pure-JAX f32 reference of the same surrogate pipeline (no Pallas)."""
    B, S, D = x_enc.shape
    decw, decb = params['decw'], params['decb']
    K = decw.shape[0]
    S_pad = params['avgt'].shape[0]
    d_ff = params['d_ff']
    avgt = params['avgt'].astype(jnp.float32)
    wcat = params['wcat'].astype(jnp.float32)
    bias = params['bias'][:, :pred_len]

    mean = jnp.mean(x_enc, axis=1, keepdims=True)
    xc = x_enc - mean
    var = jnp.mean(xc * xc, axis=1, keepdims=True)
    stdev = jnp.sqrt(var + 1e-5)
    xn = xc / stdev

    movs = [jnp.einsum('st,bsd->btd', avgt[:S, k * S_pad:k * S_pad + S], xn)
            for k in range(K)]
    logits = jnp.stack([decw[k] * xn + decb[k] for k in range(K)], axis=-1)
    w = jax.nn.softmax(logits, axis=-1)
    trend = sum(movs[k] * w[..., k] for k in range(K))
    resid = xn - trend

    trend_t = jnp.transpose(trend, (0, 2, 1))            # [B, D, S]
    resid_t = jnp.transpose(resid, (0, 2, 1))
    h = trend_t @ wcat[:S, :d_ff] + resid_t @ wcat[S_pad:S_pad + S, :d_ff]
    pre = jnp.mean(h, axis=-1, keepdims=True) + bias[None]   # [B, D, P]
    pre = jnp.transpose(pre, (0, 2, 1))                  # [B, P, D]
    return pre * stdev + mean


def make_params(key, *, seq_len, d_ff, pred_len):
    K = len(KERNEL_SIZES)
    S = seq_len
    S_pad = _round_up(S, LANE)
    d_ff_pad = _round_up(d_ff, LANE)
    P_pad = _round_up(pred_len, LANE)
    k1, k2, k3, k4, k5 = jax.random.split(key, 5)

    # stacked, transposed, lane-padded averaging matrices (bf16 for the MXU):
    # avgt[s, k*S_pad + t] = A_k[t, s]; each k-block starts on a 128-lane boundary.
    mats = _build_avg_matrices(S, KERNEL_SIZES)
    avgt_np = np.zeros((S_pad, K * S_pad), np.float32)
    for k, m in enumerate(mats):
        avgt_np[:S, k * S_pad:k * S_pad + S] = m.T
    # TODO(synk): on v5e/v6e avgt could use the int8 MXU path (values are 1/k x
    # small integer counts); kept bf16 so the same operand also runs on v7x.
    avgt = jnp.asarray(avgt_np, dtype=jnp.bfloat16)

    # series_decomp_multi's nn.Linear(1, K): default torch init U(-1, 1)
    decw = jax.random.uniform(k1, (K,), jnp.float32, -1.0, 1.0)
    decb = jax.random.uniform(k2, (K,), jnp.float32, -1.0, 1.0)

    # surrogate channel-token projections (CrossAttns/LLM stand-in), fused and
    # lane-padded: rows [0, S) -> trend, rows [S_pad, S_pad+S) -> resid, bf16.
    scale = 1.0 / np.sqrt(seq_len)
    wpt = scale * jax.random.normal(k3, (S, d_ff), jnp.float32)
    wpr = scale * jax.random.normal(k4, (S, d_ff), jnp.float32)
    wcat = jnp.zeros((2 * S_pad, d_ff_pad), jnp.float32)
    wcat = wcat.at[:S, :d_ff].set(wpt)
    wcat = wcat.at[S_pad:S_pad + S, :d_ff].set(wpr)
    wcat = wcat.astype(jnp.bfloat16)

    # linear_full bias (its weight == 1/d_ff * ones folds into an in-kernel
    # mean), zero-padded to a 128-lane output width
    bound = 1.0 / np.sqrt(d_ff)
    bias_raw = jax.random.uniform(k5, (1, pred_len), jnp.float32, -bound, bound)
    bias = jnp.zeros((1, P_pad), jnp.float32).at[:, :pred_len].set(bias_raw)

    return dict(avgt=avgt, decw=decw, decb=decb, wcat=wcat, bias=bias, d_ff=d_ff)


if __name__ == "__main__":
    # small config consistent with the module's forward
    B, seq_len, enc_in = 2, 8, 4
    d_ff, pred_len, n_macro = 16, 8, 5

    key = jax.random.PRNGKey(0)
    kx, km, kp = jax.random.split(key, 3)
    x_enc = jax.random.normal(kx, (B, seq_len, enc_in), jnp.float32)
    seq_x_mac = jax.random.normal(km, (B, seq_len, n_macro), jnp.float32)
    params = make_params(kp, seq_len=seq_len, d_ff=d_ff, pred_len=pred_len)

    dec_out, pre_pred_dfl_out, lambda_ = dblm_forward(
        x_enc, seq_x_mac, params, pred_len=pred_len, lambda_pref='B')
    jax.block_until_ready(dec_out)
    jax.block_until_ready(pre_pred_dfl_out)
    jax.block_until_ready(lambda_)

    assert dec_out.shape == (B, pred_len, enc_in)
    assert pre_pred_dfl_out.shape == (B, pred_len, enc_in)

    # loose-tolerance check vs a pure-JAX f32 reference (kernel uses bf16 matmuls
    # and an approx reciprocal, so allow a generous absolute tolerance)
    ref = dblm_reference(x_enc, params, pred_len=pred_len)
    max_err = float(jnp.max(jnp.abs(dec_out - ref)))
    assert max_err < 0.15, f"kernel vs reference max abs err {max_err}"

    assert abs(float(lambda_) - 0.9545) < 1e-6
    print("KERNEL_OK")
</pallas_src>

<mosaic_0001>
module attributes {stable_mosaic.version = 11 : i64} {
  func.func @dblm_kernel(%arg0: i32, %arg1: memref<8x128xf32, #tpu.memory_space<vmem>>, %arg2: memref<128x640xbf16, #tpu.memory_space<vmem>>, %arg3: memref<5xf32, #tpu.memory_space<smem>>, %arg4: memref<5xf32, #tpu.memory_space<smem>>, %arg5: memref<256x128xbf16, #tpu.memory_space<vmem>>, %arg6: memref<1x128xf32, #tpu.memory_space<vmem>>, %arg7: memref<8x128xf32, #tpu.memory_space<vmem>>) attributes {dimension_semantics = [#tpu.dimension_semantics<parallel>], iteration_bounds = array<i64: 1>, scalar_prefetch = 0 : i64, scratch_operands = 0 : i64, tpu.core_type = #tpu.core_type<tc>, window_params = [{transform_indices = @transform_0, window_bounds = array<i64: 8, 128>}, {pipeline_mode = #tpu.pipeline_mode<synchronous>, transform_indices = @transform_1, window_bounds = array<i64: 128, 640>}, {transform_indices = @transform_2, window_bounds = array<i64: 5>}, {transform_indices = @transform_3, window_bounds = array<i64: 5>}, {pipeline_mode = #tpu.pipeline_mode<synchronous>, transform_indices = @transform_4, window_bounds = array<i64: 256, 128>}, {pipeline_mode = #tpu.pipeline_mode<synchronous>, transform_indices = @transform_5, window_bounds = array<i64: 1, 128>}, {transform_indices = @transform_6, window_bounds = array<i64: 8, 128>}]} {
    %c0 = arith.constant 0 : index
    %c0_0 = arith.constant 0 : index
    %0 = vector.load %arg1[%c0, %c0_0] : memref<8x128xf32, #tpu.memory_space<vmem>>, vector<8x128xf32>
    %cst = arith.constant dense<0.000000e+00> : vector<8xf32>
    %1 = vector.multi_reduction <add>, %0, %cst [1] : vector<8x128xf32> to vector<8xf32>
    %2 = vector.shape_cast %1 : vector<8xf32> to vector<8x1xf32>
    %cst_1 = arith.constant 1.250000e-01 : f32
    %3 = vector.broadcast %cst_1 : f32 to vector<8x1xf32>
    %4 = arith.mulf %2, %3 : vector<8x1xf32>
    %5 = vector.broadcast %4 : vector<8x1xf32> to vector<8x128xf32>
    %6 = arith.subf %0, %5 : vector<8x128xf32>
    %7 = tpu.iota {dimensions = array<i32: 1>} : vector<8x128xi32>
    %c8_i32 = arith.constant 8 : i32
    %8 = vector.broadcast %c8_i32 : i32 to vector<8x128xi32>
    %9 = arith.cmpi slt, %7, %8 : vector<8x128xi32>
    %cst_2 = arith.constant 0.000000e+00 : f32
    %10 = vector.broadcast %cst_2 : f32 to vector<8x128xf32>
    %11 = arith.select %9, %6, %10 : vector<8x128xi1>, vector<8x128xf32>
    %12 = arith.mulf %11, %11 : vector<8x128xf32>
    %cst_3 = arith.constant dense<0.000000e+00> : vector<8xf32>
    %13 = vector.multi_reduction <add>, %12, %cst_3 [1] : vector<8x128xf32> to vector<8xf32>
    %14 = vector.shape_cast %13 : vector<8xf32> to vector<8x1xf32>
    %cst_4 = arith.constant 1.250000e-01 : f32
    %15 = vector.broadcast %cst_4 : f32 to vector<8x1xf32>
    %16 = arith.mulf %14, %15 : vector<8x1xf32>
    %cst_5 = arith.constant 9.99999974E-6 : f32
    %17 = vector.broadcast %cst_5 : f32 to vector<8x1xf32>
    %18 = arith.addf %16, %17 : vector<8x1xf32>
    %19 = math.rsqrt %18 : vector<8x1xf32>
    %cst_6 = arith.constant 9.99999974E-6 : f32
    %20 = vector.broadcast %cst_6 : f32 to vector<8x1xf32>
    %21 = arith.addf %16, %20 : vector<8x1xf32>
    %22 = arith.mulf %21, %19 : vector<8x1xf32>
    %23 = vector.broadcast %19 : vector<8x1xf32> to vector<8x128xf32>
    %24 = arith.mulf %11, %23 : vector<8x128xf32>
    %25 = arith.truncf %24 : vector<8x128xf32> to vector<8x128xbf16>
    %c0_7 = arith.constant 0 : index
    %26 = memref.load %arg3[%c0_7] : memref<5xf32, #tpu.memory_space<smem>>
    %27 = vector.broadcast %26 : f32 to vector<8x128xf32>
    %28 = arith.mulf %27, %24 : vector<8x128xf32>
    %c0_8 = arith.constant 0 : index
    %29 = memref.load %arg4[%c0_8] : memref<5xf32, #tpu.memory_space<smem>>
    %30 = vector.broadcast %29 : f32 to vector<8x128xf32>
    %31 = arith.addf %28, %30 : vector<8x128xf32>
    %c1 = arith.constant 1 : index
    %32 = memref.load %arg3[%c1] : memref<5xf32, #tpu.memory_space<smem>>
    %33 = vector.broadcast %32 : f32 to vector<8x128xf32>
    %34 = arith.mulf %33, %24 : vector<8x128xf32>
    %c1_9 = arith.constant 1 : index
    %35 = memref.load %arg4[%c1_9] : memref<5xf32, #tpu.memory_space<smem>>
    %36 = vector.broadcast %35 : f32 to vector<8x128xf32>
    %37 = arith.addf %34, %36 : vector<8x128xf32>
    %38 = arith.maximumf %31, %37 : vector<8x128xf32>
    %c2 = arith.constant 2 : index
    %39 = memref.load %arg3[%c2] : memref<5xf32, #tpu.memory_space<smem>>
    %40 = vector.broadcast %39 : f32 to vector<8x128xf32>
    %41 = arith.mulf %40, %24 : vector<8x128xf32>
    %c2_10 = arith.constant 2 : index
    %42 = memref.load %arg4[%c2_10] : memref<5xf32, #tpu.memory_space<smem>>
    %43 = vector.broadcast %42 : f32 to vector<8x128xf32>
    %44 = arith.addf %41, %43 : vector<8x128xf32>
    %45 = arith.maximumf %38, %44 : vector<8x128xf32>
    %c3 = arith.constant 3 : index
    %46 = memref.load %arg3[%c3] : memref<5xf32, #tpu.memory_space<smem>>
    %47 = vector.broadcast %46 : f32 to vector<8x128xf32>
    %48 = arith.mulf %47, %24 : vector<8x128xf32>
    %c3_11 = arith.constant 3 : index
    %49 = memref.load %arg4[%c3_11] : memref<5xf32, #tpu.memory_space<smem>>
    %50 = vector.broadcast %49 : f32 to vector<8x128xf32>
    %51 = arith.addf %48, %50 : vector<8x128xf32>
    %52 = arith.maximumf %45, %51 : vector<8x128xf32>
    %c4 = arith.constant 4 : index
    %53 = memref.load %arg3[%c4] : memref<5xf32, #tpu.memory_space<smem>>
    %54 = vector.broadcast %53 : f32 to vector<8x128xf32>
    %55 = arith.mulf %54, %24 : vector<8x128xf32>
    %c4_12 = arith.constant 4 : index
    %56 = memref.load %arg4[%c4_12] : memref<5xf32, #tpu.memory_space<smem>>
    %57 = vector.broadcast %56 : f32 to vector<8x128xf32>
    %58 = arith.addf %55, %57 : vector<8x128xf32>
    %59 = arith.maximumf %52, %58 : vector<8x128xf32>
    %cst_13 = arith.constant 0.000000e+00 : f32
    %60 = vector.broadcast %cst_13 : f32 to vector<8x128xf32>
    %cst_14 = arith.constant 0.000000e+00 : f32
    %61 = vector.broadcast %cst_14 : f32 to vector<8x128xf32>
    %c0_15 = arith.constant 0 : index
    %c0_16 = arith.constant 0 : index
    %62 = vector.load %arg2[%c0_15, %c0_16] : memref<128x640xbf16, #tpu.memory_space<vmem>>, vector<128x128xbf16>
    %cst_17 = arith.constant dense<0.000000e+00> : vector<8x128xf32>
    %63 = tpu.matmul %25, %62, %cst_17 {dimension_numbers = #tpu.dot_dimension_numbers<[1], [0], [0], [1], [0, 0, 1, 1], [], []>} : vector<8x128xbf16>, vector<128x128xbf16>, vector<8x128xf32> -> vector<8x128xf32>
    %c0_18 = arith.constant 0 : index
    %64 = memref.load %arg3[%c0_18] : memref<5xf32, #tpu.memory_space<smem>>
    %65 = vector.broadcast %64 : f32 to vector<8x128xf32>
    %66 = arith.mulf %65, %24 : vector<8x128xf32>
    %c0_19 = arith.constant 0 : index
    %67 = memref.load %arg4[%c0_19] : memref<5xf32, #tpu.memory_space<smem>>
    %68 = vector.broadcast %67 : f32 to vector<8x128xf32>
    %69 = arith.addf %66, %68 : vector<8x128xf32>
    %70 = arith.subf %69, %59 : vector<8x128xf32>
    %71 = math.exp %70 : vector<8x128xf32>
    %72 = arith.addf %60, %71 : vector<8x128xf32>
    %73 = arith.mulf %63, %71 : vector<8x128xf32>
    %74 = arith.addf %61, %73 : vector<8x128xf32>
    %c0_20 = arith.constant 0 : index
    %c128 = arith.constant 128 : index
    %75 = vector.load %arg2[%c0_20, %c128] : memref<128x640xbf16, #tpu.memory_space<vmem>>, vector<128x128xbf16>
    %cst_21 = arith.constant dense<0.000000e+00> : vector<8x128xf32>
    %76 = tpu.matmul %25, %75, %cst_21 {dimension_numbers = #tpu.dot_dimension_numbers<[1], [0], [0], [1], [0, 0, 1, 1], [], []>} : vector<8x128xbf16>, vector<128x128xbf16>, vector<8x128xf32> -> vector<8x128xf32>
    %c1_22 = arith.constant 1 : index
    %77 = memref.load %arg3[%c1_22] : memref<5xf32, #tpu.memory_space<smem>>
    %78 = vector.broadcast %77 : f32 to vector<8x128xf32>
    %79 = arith.mulf %78, %24 : vector<8x128xf32>
    %c1_23 = arith.constant 1 : index
    %80 = memref.load %arg4[%c1_23] : memref<5xf32, #tpu.memory_space<smem>>
    %81 = vector.broadcast %80 : f32 to vector<8x128xf32>
    %82 = arith.addf %79, %81 : vector<8x128xf32>
    %83 = arith.subf %82, %59 : vector<8x128xf32>
    %84 = math.exp %83 : vector<8x128xf32>
    %85 = arith.addf %72, %84 : vector<8x128xf32>
    %86 = arith.mulf %76, %84 : vector<8x128xf32>
    %87 = arith.addf %74, %86 : vector<8x128xf32>
    %c0_24 = arith.constant 0 : index
    %c256 = arith.constant 256 : index
    %88 = vector.load %arg2[%c0_24, %c256] : memref<128x640xbf16, #tpu.memory_space<vmem>>, vector<128x128xbf16>
    %cst_25 = arith.constant dense<0.000000e+00> : vector<8x128xf32>
    %89 = tpu.matmul %25, %88, %cst_25 {dimension_numbers = #tpu.dot_dimension_numbers<[1], [0], [0], [1], [0, 0, 1, 1], [], []>} : vector<8x128xbf16>, vector<128x128xbf16>, vector<8x128xf32> -> vector<8x128xf32>
    %c2_26 = arith.constant 2 : index
    %90 = memref.load %arg3[%c2_26] : memref<5xf32, #tpu.memory_space<smem>>
    %91 = vector.broadcast %90 : f32 to vector<8x128xf32>
    %92 = arith.mulf %91, %24 : vector<8x128xf32>
    %c2_27 = arith.constant 2 : index
    %93 = memref.load %arg4[%c2_27] : memref<5xf32, #tpu.memory_space<smem>>
    %94 = vector.broadcast %93 : f32 to vector<8x128xf32>
    %95 = arith.addf %92, %94 : vector<8x128xf32>
    %96 = arith.subf %95, %59 : vector<8x128xf32>
    %97 = math.exp %96 : vector<8x128xf32>
    %98 = arith.addf %85, %97 : vector<8x128xf32>
    %99 = arith.mulf %89, %97 : vector<8x128xf32>
    %100 = arith.addf %87, %99 : vector<8x128xf32>
    %c0_28 = arith.constant 0 : index
    %c384 = arith.constant 384 : index
    %101 = vector.load %arg2[%c0_28, %c384] : memref<128x640xbf16, #tpu.memory_space<vmem>>, vector<128x128xbf16>
    %cst_29 = arith.constant dense<0.000000e+00> : vector<8x128xf32>
    %102 = tpu.matmul %25, %101, %cst_29 {dimension_numbers = #tpu.dot_dimension_numbers<[1], [0], [0], [1], [0, 0, 1, 1], [], []>} : vector<8x128xbf16>, vector<128x128xbf16>, vector<8x128xf32> -> vector<8x128xf32>
    %c3_30 = arith.constant 3 : index
    %103 = memref.load %arg3[%c3_30] : memref<5xf32, #tpu.memory_space<smem>>
    %104 = vector.broadcast %103 : f32 to vector<8x128xf32>
    %105 = arith.mulf %104, %24 : vector<8x128xf32>
    %c3_31 = arith.constant 3 : index
    %106 = memref.load %arg4[%c3_31] : memref<5xf32, #tpu.memory_space<smem>>
    %107 = vector.broadcast %106 : f32 to vector<8x128xf32>
    %108 = arith.addf %105, %107 : vector<8x128xf32>
    %109 = arith.subf %108, %59 : vector<8x128xf32>
    %110 = math.exp %109 : vector<8x128xf32>
    %111 = arith.addf %98, %110 : vector<8x128xf32>
    %112 = arith.mulf %102, %110 : vector<8x128xf32>
    %113 = arith.addf %100, %112 : vector<8x128xf32>
    %c0_32 = arith.constant 0 : index
    %c512 = arith.constant 512 : index
    %114 = vector.load %arg2[%c0_32, %c512] : memref<128x640xbf16, #tpu.memory_space<vmem>>, vector<128x128xbf16>
    %cst_33 = arith.constant dense<0.000000e+00> : vector<8x128xf32>
    %115 = tpu.matmul %25, %114, %cst_33 {dimension_numbers = #tpu.dot_dimension_numbers<[1], [0], [0], [1], [0, 0, 1, 1], [], []>} : vector<8x128xbf16>, vector<128x128xbf16>, vector<8x128xf32> -> vector<8x128xf32>
    %c4_34 = arith.constant 4 : index
    %116 = memref.load %arg3[%c4_34] : memref<5xf32, #tpu.memory_space<smem>>
    %117 = vector.broadcast %116 : f32 to vector<8x128xf32>
    %118 = arith.mulf %117, %24 : vector<8x128xf32>
    %c4_35 = arith.constant 4 : index
    %119 = memref.load %arg4[%c4_35] : memref<5xf32, #tpu.memory_space<smem>>
    %120 = vector.broadcast %119 : f32 to vector<8x128xf32>
    %121 = arith.addf %118, %120 : vector<8x128xf32>
    %122 = arith.subf %121, %59 : vector<8x128xf32>
    %123 = math.exp %122 : vector<8x128xf32>
    %124 = arith.addf %111, %123 : vector<8x128xf32>
    %125 = arith.mulf %115, %123 : vector<8x128xf32>
    %126 = arith.addf %113, %125 : vector<8x128xf32>
    %127 = tpu.reciprocal %124 {approx = true} : vector<8x128xf32> -> vector<8x128xf32>
    %128 = arith.mulf %126, %127 : vector<8x128xf32>
    %129 = arith.subf %24, %128 : vector<8x128xf32>
    %130 = arith.truncf %128 : vector<8x128xf32> to vector<8x128xbf16>
    %131 = arith.truncf %129 : vector<8x128xf32> to vector<8x128xbf16>
    %132 = tpu.concatenate %130, %131 in 1 : vector<8x128xbf16>, vector<8x128xbf16> -> vector<8x256xbf16>
    %c0_36 = arith.constant 0 : index
    %c0_37 = arith.constant 0 : index
    %133 = vector.load %arg5[%c0_36, %c0_37] : memref<256x128xbf16, #tpu.memory_space<vmem>>, vector<256x128xbf16>
    %cst_38 = arith.constant dense<0.000000e+00> : vector<8x128xf32>
    %134 = tpu.matmul %132, %133, %cst_38 {dimension_numbers = #tpu.dot_dimension_numbers<[1], [0], [0], [1], [0, 0, 1, 1], [], []>} : vector<8x256xbf16>, vector<256x128xbf16>, vector<8x128xf32> -> vector<8x128xf32>
    %cst_39 = arith.constant dense<0.000000e+00> : vector<8xf32>
    %135 = vector.multi_reduction <add>, %134, %cst_39 [1] : vector<8x128xf32> to vector<8xf32>
    %136 = vector.shape_cast %135 : vector<8xf32> to vector<8x1xf32>
    %cst_40 = arith.constant 6.250000e-02 : f32
    %137 = vector.broadcast %cst_40 : f32 to vector<8x1xf32>
    %138 = arith.mulf %136, %137 : vector<8x1xf32>
    %c0_41 = arith.constant 0 : index
    %c0_42 = arith.constant 0 : index
    %139 = vector.load %arg6[%c0_41, %c0_42] : memref<1x128xf32, #tpu.memory_space<vmem>>, vector<1x128xf32>
    %140 = vector.broadcast %138 : vector<8x1xf32> to vector<8x128xf32>
    %141 = vector.broadcast %139 : vector<1x128xf32> to vector<8x128xf32>
    %142 = arith.addf %140, %141 : vector<8x128xf32>
    %143 = vector.broadcast %22 : vector<8x1xf32> to vector<8x128xf32>
    %144 = arith.mulf %142, %143 : vector<8x128xf32>
    %145 = vector.broadcast %4 : vector<8x1xf32> to vector<8x128xf32>
    %146 = arith.addf %144, %145 : vector<8x128xf32>
    %c0_43 = arith.constant 0 : index
    %c0_44 = arith.constant 0 : index
    %147 = vector.load %arg7[%c0_43, %c0_44] : memref<8x128xf32, #tpu.memory_space<vmem>>, vector<8x128xf32>
    tpu.vector_store %arg7[%c0_43, %c0_44], %146 {strides = array<i32>} : memref<8x128xf32, #tpu.memory_space<vmem>>, vector<8x128xf32>,
    return
  }
  func.func @transform_0(%arg0: i32) -> (i32, i32) {
    %c0_i32 = arith.constant 0 : i32
    %c0_i32_0 = arith.constant 0 : i32
    return %arg0, %c0_i32 : i32, i32
  }
  func.func @transform_1(%arg0: i32) -> (i32, i32) {
    %c0_i32 = arith.constant 0 : i32
    %c0_i32_0 = arith.constant 0 : i32
    %c0_i32_1 = arith.constant 0 : i32
    return %c0_i32, %c0_i32_0 : i32, i32
  }
  func.func @transform_2(%arg0: i32) -> i32 {
    %c0_i32 = arith.constant 0 : i32
    %c0_i32_0 = arith.constant 0 : i32
    return %c0_i32 : i32
  }
  func.func @transform_3(%arg0: i32) -> i32 {
    %c0_i32 = arith.constant 0 : i32
    %c0_i32_0 = arith.constant 0 : i32
    return %c0_i32 : i32
  }
  func.func @transform_4(%arg0: i32) -> (i32, i32) {
    %c0_i32 = arith.constant 0 : i32
    %c0_i32_0 = arith.constant 0 : i32
    %c0_i32_1 = arith.constant 0 : i32
    return %c0_i32, %c0_i32_0 : i32, i32
  }
  func.func @transform_5(%arg0: i32) -> (i32, i32) {
    %c0_i32 = arith.constant 0 : i32
    %c0_i32_0 = arith.constant 0 : i32
    %c0_i32_1 = arith.constant 0 : i32
    return %c0_i32, %c0_i32_0 : i32, i32
  }
  func.func @transform_6(%arg0: i32) -> (i32, i32) {
    %c0_i32 = arith.constant 0 : i32
    %c0_i32_0 = arith.constant 0 : i32
    return %arg0, %c0_i32 : i32, i32
  }
}

module attributes {stable_mosaic.version = 11 : i64} {
  func.func @dblm_kernel(%arg0: i32, %arg1: memref<8x128xf32, #tpu.memory_space<vmem>>, %arg2: memref<128x640xbf16, #tpu.memory_space<vmem>>, %arg3: memref<5xf32, #tpu.memory_space<smem>>, %arg4: memref<5xf32, #tpu.memory_space<smem>>, %arg5: memref<256x128xbf16, #tpu.memory_space<vmem>>, %arg6: memref<1x128xf32, #tpu.memory_space<vmem>>, %arg7: memref<8x128xf32, #tpu.memory_space<vmem>>) attributes {dimension_semantics = [#tpu.dimension_semantics<parallel>], iteration_bounds = array<i64: 1>, scalar_prefetch = 0 : i64, scratch_operands = 0 : i64, tpu.core_type = #tpu.core_type<tc>, window_params = [{transform_indices = @transform_0, window_bounds = array<i64: 8, 128>}, {pipeline_mode = #tpu.pipeline_mode<synchronous>, transform_indices = @transform_1, window_bounds = array<i64: 128, 640>}, {transform_indices = @transform_2, window_bounds = array<i64: 5>}, {transform_indices = @transform_3, window_bounds = array<i64: 5>}, {pipeline_mode = #tpu.pipeline_mode<synchronous>, transform_indices = @transform_4, window_bounds = array<i64: 256, 128>}, {pipeline_mode = #tpu.pipeline_mode<synchronous>, transform_indices = @transform_5, window_bounds = array<i64: 1, 128>}, {transform_indices = @transform_6, window_bounds = array<i64: 8, 128>}]} {
    %c0 = arith.constant 0 : index
    %c0_0 = arith.constant 0 : index
    %0 = vector.load %arg1[%c0, %c0_0] : memref<8x128xf32, #tpu.memory_space<vmem>>, vector<8x128xf32>
    %cst = arith.constant dense<0.000000e+00> : vector<8xf32>
    %1 = vector.multi_reduction <add>, %0, %cst [1] : vector<8x128xf32> to vector<8xf32>
    %2 = vector.shape_cast %1 : vector<8xf32> to vector<8x1xf32>
    %cst_1 = arith.constant 1.250000e-01 : f32
    %3 = vector.broadcast %cst_1 : f32 to vector<8x1xf32>
    %4 = arith.mulf %2, %3 : vector<8x1xf32>
    %5 = vector.broadcast %4 : vector<8x1xf32> to vector<8x128xf32>
    %6 = arith.subf %0, %5 : vector<8x128xf32>
    %7 = tpu.iota {dimensions = array<i32: 1>} : vector<8x128xi32>
    %c8_i32 = arith.constant 8 : i32
    %8 = vector.broadcast %c8_i32 : i32 to vector<8x128xi32>
    %9 = arith.cmpi slt, %7, %8 : vector<8x128xi32>
    %cst_2 = arith.constant 0.000000e+00 : f32
    %10 = vector.broadcast %cst_2 : f32 to vector<8x128xf32>
    %11 = arith.select %9, %6, %10 : vector<8x128xi1>, vector<8x128xf32>
    %12 = arith.mulf %11, %11 : vector<8x128xf32>
    %cst_3 = arith.constant dense<0.000000e+00> : vector<8xf32>
    %13 = vector.multi_reduction <add>, %12, %cst_3 [1] : vector<8x128xf32> to vector<8xf32>
    %14 = vector.shape_cast %13 : vector<8xf32> to vector<8x1xf32>
    %cst_4 = arith.constant 1.250000e-01 : f32
    %15 = vector.broadcast %cst_4 : f32 to vector<8x1xf32>
    %16 = arith.mulf %14, %15 : vector<8x1xf32>
    %cst_5 = arith.constant 9.99999974E-6 : f32
    %17 = vector.broadcast %cst_5 : f32 to vector<8x1xf32>
    %18 = arith.addf %16, %17 : vector<8x1xf32>
    %19 = math.rsqrt %18 : vector<8x1xf32>
    %cst_6 = arith.constant 9.99999974E-6 : f32
    %20 = vector.broadcast %cst_6 : f32 to vector<8x1xf32>
    %21 = arith.addf %16, %20 : vector<8x1xf32>
    %22 = arith.mulf %21, %19 : vector<8x1xf32>
    %23 = vector.broadcast %19 : vector<8x1xf32> to vector<8x128xf32>
    %24 = arith.mulf %11, %23 : vector<8x128xf32>
    %25 = arith.truncf %24 : vector<8x128xf32> to vector<8x128xbf16>
    %c0_7 = arith.constant 0 : index
    %26 = memref.load %arg3[%c0_7] : memref<5xf32, #tpu.memory_space<smem>>
    %27 = vector.broadcast %26 : f32 to vector<8x128xf32>
    %28 = arith.mulf %27, %24 : vector<8x128xf32>
    %c0_8 = arith.constant 0 : index
    %29 = memref.load %arg4[%c0_8] : memref<5xf32, #tpu.memory_space<smem>>
    %30 = vector.broadcast %29 : f32 to vector<8x128xf32>
    %31 = arith.addf %28, %30 : vector<8x128xf32>
    %c1 = arith.constant 1 : index
    %32 = memref.load %arg3[%c1] : memref<5xf32, #tpu.memory_space<smem>>
    %33 = vector.broadcast %32 : f32 to vector<8x128xf32>
    %34 = arith.mulf %33, %24 : vector<8x128xf32>
    %c1_9 = arith.constant 1 : index
    %35 = memref.load %arg4[%c1_9] : memref<5xf32, #tpu.memory_space<smem>>
    %36 = vector.broadcast %35 : f32 to vector<8x128xf32>
    %37 = arith.addf %34, %36 : vector<8x128xf32>
    %38 = arith.maximumf %31, %37 : vector<8x128xf32>
    %c2 = arith.constant 2 : index
    %39 = memref.load %arg3[%c2] : memref<5xf32, #tpu.memory_space<smem>>
    %40 = vector.broadcast %39 : f32 to vector<8x128xf32>
    %41 = arith.mulf %40, %24 : vector<8x128xf32>
    %c2_10 = arith.constant 2 : index
    %42 = memref.load %arg4[%c2_10] : memref<5xf32, #tpu.memory_space<smem>>
    %43 = vector.broadcast %42 : f32 to vector<8x128xf32>
    %44 = arith.addf %41, %43 : vector<8x128xf32>
    %45 = arith.maximumf %38, %44 : vector<8x128xf32>
    %c3 = arith.constant 3 : index
    %46 = memref.load %arg3[%c3] : memref<5xf32, #tpu.memory_space<smem>>
    %47 = vector.broadcast %46 : f32 to vector<8x128xf32>
    %48 = arith.mulf %47, %24 : vector<8x128xf32>
    %c3_11 = arith.constant 3 : index
    %49 = memref.load %arg4[%c3_11] : memref<5xf32, #tpu.memory_space<smem>>
    %50 = vector.broadcast %49 : f32 to vector<8x128xf32>
    %51 = arith.addf %48, %50 : vector<8x128xf32>
    %52 = arith.maximumf %45, %51 : vector<8x128xf32>
    %c4 = arith.constant 4 : index
    %53 = memref.load %arg3[%c4] : memref<5xf32, #tpu.memory_space<smem>>
    %54 = vector.broadcast %53 : f32 to vector<8x128xf32>
    %55 = arith.mulf %54, %24 : vector<8x128xf32>
    %c4_12 = arith.constant 4 : index
    %56 = memref.load %arg4[%c4_12] : memref<5xf32, #tpu.memory_space<smem>>
    %57 = vector.broadcast %56 : f32 to vector<8x128xf32>
    %58 = arith.addf %55, %57 : vector<8x128xf32>
    %59 = arith.maximumf %52, %58 : vector<8x128xf32>
    %cst_13 = arith.constant 0.000000e+00 : f32
    %60 = vector.broadcast %cst_13 : f32 to vector<8x128xf32>
    %cst_14 = arith.constant 0.000000e+00 : f32
    %61 = vector.broadcast %cst_14 : f32 to vector<8x128xf32>
    %c0_15 = arith.constant 0 : index
    %c0_16 = arith.constant 0 : index
    %62 = vector.load %arg2[%c0_15, %c0_16] : memref<128x640xbf16, #tpu.memory_space<vmem>>, vector<128x128xbf16>
    %cst_17 = arith.constant dense<0.000000e+00> : vector<8x128xf32>
    %63 = tpu.matmul %25, %62, %cst_17 {dimension_numbers = #tpu.dot_dimension_numbers<[1], [0], [0], [1], [0, 0, 1, 1], [], []>} : vector<8x128xbf16>, vector<128x128xbf16>, vector<8x128xf32> -> vector<8x128xf32>
    %c0_18 = arith.constant 0 : index
    %64 = memref.load %arg3[%c0_18] : memref<5xf32, #tpu.memory_space<smem>>
    %65 = vector.broadcast %64 : f32 to vector<8x128xf32>
    %66 = arith.mulf %65, %24 : vector<8x128xf32>
    %c0_19 = arith.constant 0 : index
    %67 = memref.load %arg4[%c0_19] : memref<5xf32, #tpu.memory_space<smem>>
    %68 = vector.broadcast %67 : f32 to vector<8x128xf32>
    %69 = arith.addf %66, %68 : vector<8x128xf32>
    %70 = arith.subf %69, %59 : vector<8x128xf32>
    %71 = math.exp %70 : vector<8x128xf32>
    %72 = arith.addf %60, %71 : vector<8x128xf32>
    %73 = arith.mulf %63, %71 : vector<8x128xf32>
    %74 = arith.addf %61, %73 : vector<8x128xf32>
    %c0_20 = arith.constant 0 : index
    %c128 = arith.constant 128 : index
    %75 = vector.load %arg2[%c0_20, %c128] : memref<128x640xbf16, #tpu.memory_space<vmem>>, vector<128x128xbf16>
    %cst_21 = arith.constant dense<0.000000e+00> : vector<8x128xf32>
    %76 = tpu.matmul %25, %75, %cst_21 {dimension_numbers = #tpu.dot_dimension_numbers<[1], [0], [0], [1], [0, 0, 1, 1], [], []>} : vector<8x128xbf16>, vector<128x128xbf16>, vector<8x128xf32> -> vector<8x128xf32>
    %c1_22 = arith.constant 1 : index
    %77 = memref.load %arg3[%c1_22] : memref<5xf32, #tpu.memory_space<smem>>
    %78 = vector.broadcast %77 : f32 to vector<8x128xf32>
    %79 = arith.mulf %78, %24 : vector<8x128xf32>
    %c1_23 = arith.constant 1 : index
    %80 = memref.load %arg4[%c1_23] : memref<5xf32, #tpu.memory_space<smem>>
    %81 = vector.broadcast %80 : f32 to vector<8x128xf32>
    %82 = arith.addf %79, %81 : vector<8x128xf32>
    %83 = arith.subf %82, %59 : vector<8x128xf32>
    %84 = math.exp %83 : vector<8x128xf32>
    %85 = arith.addf %72, %84 : vector<8x128xf32>
    %86 = arith.mulf %76, %84 : vector<8x128xf32>
    %87 = arith.addf %74, %86 : vector<8x128xf32>
    %c0_24 = arith.constant 0 : index
    %c256 = arith.constant 256 : index
    %88 = vector.load %arg2[%c0_24, %c256] : memref<128x640xbf16, #tpu.memory_space<vmem>>, vector<128x128xbf16>
    %cst_25 = arith.constant dense<0.000000e+00> : vector<8x128xf32>
    %89 = tpu.matmul %25, %88, %cst_25 {dimension_numbers = #tpu.dot_dimension_numbers<[1], [0], [0], [1], [0, 0, 1, 1], [], []>} : vector<8x128xbf16>, vector<128x128xbf16>, vector<8x128xf32> -> vector<8x128xf32>
    %c2_26 = arith.constant 2 : index
    %90 = memref.load %arg3[%c2_26] : memref<5xf32, #tpu.memory_space<smem>>
    %91 = vector.broadcast %90 : f32 to vector<8x128xf32>
    %92 = arith.mulf %91, %24 : vector<8x128xf32>
    %c2_27 = arith.constant 2 : index
    %93 = memref.load %arg4[%c2_27] : memref<5xf32, #tpu.memory_space<smem>>
    %94 = vector.broadcast %93 : f32 to vector<8x128xf32>
    %95 = arith.addf %92, %94 : vector<8x128xf32>
    %96 = arith.subf %95, %59 : vector<8x128xf32>
    %97 = math.exp %96 : vector<8x128xf32>
    %98 = arith.addf %85, %97 : vector<8x128xf32>
    %99 = arith.mulf %89, %97 : vector<8x128xf32>
    %100 = arith.addf %87, %99 : vector<8x128xf32>
    %c0_28 = arith.constant 0 : index
    %c384 = arith.constant 384 : index
    %101 = vector.load %arg2[%c0_28, %c384] : memref<128x640xbf16, #tpu.memory_space<vmem>>, vector<128x128xbf16>
    %cst_29 = arith.constant dense<0.000000e+00> : vector<8x128xf32>
    %102 = tpu.matmul %25, %101, %cst_29 {dimension_numbers = #tpu.dot_dimension_numbers<[1], [0], [0], [1], [0, 0, 1, 1], [], []>} : vector<8x128xbf16>, vector<128x128xbf16>, vector<8x128xf32> -> vector<8x128xf32>
    %c3_30 = arith.constant 3 : index
    %103 = memref.load %arg3[%c3_30] : memref<5xf32, #tpu.memory_space<smem>>
    %104 = vector.broadcast %103 : f32 to vector<8x128xf32>
    %105 = arith.mulf %104, %24 : vector<8x128xf32>
    %c3_31 = arith.constant 3 : index
    %106 = memref.load %arg4[%c3_31] : memref<5xf32, #tpu.memory_space<smem>>
    %107 = vector.broadcast %106 : f32 to vector<8x128xf32>
    %108 = arith.addf %105, %107 : vector<8x128xf32>
    %109 = arith.subf %108, %59 : vector<8x128xf32>
    %110 = math.exp %109 : vector<8x128xf32>
    %111 = arith.addf %98, %110 : vector<8x128xf32>
    %112 = arith.mulf %102, %110 : vector<8x128xf32>
    %113 = arith.addf %100, %112 : vector<8x128xf32>
    %c0_32 = arith.constant 0 : index
    %c512 = arith.constant 512 : index
    %114 = vector.load %arg2[%c0_32, %c512] : memref<128x640xbf16, #tpu.memory_space<vmem>>, vector<128x128xbf16>
    %cst_33 = arith.constant dense<0.000000e+00> : vector<8x128xf32>
    %115 = tpu.matmul %25, %114, %cst_33 {dimension_numbers = #tpu.dot_dimension_numbers<[1], [0], [0], [1], [0, 0, 1, 1], [], []>} : vector<8x128xbf16>, vector<128x128xbf16>, vector<8x128xf32> -> vector<8x128xf32>
    %c4_34 = arith.constant 4 : index
    %116 = memref.load %arg3[%c4_34] : memref<5xf32, #tpu.memory_space<smem>>
    %117 = vector.broadcast %116 : f32 to vector<8x128xf32>
    %118 = arith.mulf %117, %24 : vector<8x128xf32>
    %c4_35 = arith.constant 4 : index
    %119 = memref.load %arg4[%c4_35] : memref<5xf32, #tpu.memory_space<smem>>
    %120 = vector.broadcast %119 : f32 to vector<8x128xf32>
    %121 = arith.addf %118, %120 : vector<8x128xf32>
    %122 = arith.subf %121, %59 : vector<8x128xf32>
    %123 = math.exp %122 : vector<8x128xf32>
    %124 = arith.addf %111, %123 : vector<8x128xf32>
    %125 = arith.mulf %115, %123 : vector<8x128xf32>
    %126 = arith.addf %113, %125 : vector<8x128xf32>
    %127 = tpu.reciprocal %124 {approx = true} : vector<8x128xf32> -> vector<8x128xf32>
    %128 = arith.mulf %126, %127 : vector<8x128xf32>
    %129 = arith.subf %24, %128 : vector<8x128xf32>
    %130 = arith.truncf %128 : vector<8x128xf32> to vector<8x128xbf16>
    %131 = arith.truncf %129 : vector<8x128xf32> to vector<8x128xbf16>
    %132 = tpu.concatenate %130, %131 in 1 : vector<8x128xbf16>, vector<8x128xbf16> -> vector<8x256xbf16>
    %c0_36 = arith.constant 0 : index
    %c0_37 = arith.constant 0 : index
    %133 = vector.load %arg5[%c0_36, %c0_37] : memref<256x128xbf16, #tpu.memory_space<vmem>>, vector<256x128xbf16>
    %cst_38 = arith.constant dense<0.000000e+00> : vector<8x128xf32>
    %134 = tpu.matmul %132, %133, %cst_38 {dimension_numbers = #tpu.dot_dimension_numbers<[1], [0], [0], [1], [0, 0, 1, 1], [], []>} : vector<8x256xbf16>, vector<256x128xbf16>, vector<8x128xf32> -> vector<8x128xf32>
    %cst_39 = arith.constant dense<0.000000e+00> : vector<8xf32>
    %135 = vector.multi_reduction <add>, %134, %cst_39 [1] : vector<8x128xf32> to vector<8xf32>
    %136 = vector.shape_cast %135 : vector<8xf32> to vector<8x1xf32>
    %cst_40 = arith.constant 6.250000e-02 : f32
    %137 = vector.broadcast %cst_40 : f32 to vector<8x1xf32>
    %138 = arith.mulf %136, %137 : vector<8x1xf32>
    %c0_41 = arith.constant 0 : index
    %c0_42 = arith.constant 0 : index
    %139 = vector.load %arg6[%c0_41, %c0_42] : memref<1x128xf32, #tpu.memory_space<vmem>>, vector<1x128xf32>
    %140 = vector.broadcast %138 : vector<8x1xf32> to vector<8x128xf32>
    %141 = vector.broadcast %139 : vector<1x128xf32> to vector<8x128xf32>
    %142 = arith.addf %140, %141 : vector<8x128xf32>
    %143 = vector.broadcast %22 : vector<8x1xf32> to vector<8x128xf32>
    %144 = arith.mulf %142, %143 : vector<8x128xf32>
    %145 = vector.broadcast %4 : vector<8x1xf32> to vector<8x128xf32>
    %146 = arith.addf %144, %145 : vector<8x128xf32>
    %c0_43 = arith.constant 0 : index
    %c0_44 = arith.constant 0 : index
    %147 = vector.load %arg7[%c0_43, %c0_44] : memref<8x128xf32, #tpu.memory_space<vmem>>, vector<8x128xf32>
    tpu.vector_store %arg7[%c0_43, %c0_44], %146 {strides = array<i32>} : memref<8x128xf32, #tpu.memory_space<vmem>>, vector<8x128xf32>,
    return
  }
  func.func @transform_0(%arg0: i32) -> (i32, i32) {
    %c0_i32 = arith.constant 0 : i32
    %c0_i32_0 = arith.constant 0 : i32
    return %arg0, %c0_i32 : i32, i32
  }
  func.func @transform_1(%arg0: i32) -> (i32, i32) {
    %c0_i32 = arith.constant 0 : i32
    %c0_i32_0 = arith.constant 0 : i32
    %c0_i32_1 = arith.constant 0 : i32
    return %c0_i32, %c0_i32_0 : i32, i32
  }
  func.func @transform_2(%arg0: i32) -> i32 {
    %c0_i32 = arith.constant 0 : i32
    %c0_i32_0 = arith.constant 0 : i32
    return %c0_i32 : i32
  }
  func.func @transform_3(%arg0: i32) -> i32 {
    %c0_i32 = arith.constant 0 : i32
    %c0_i32_0 = arith.constant 0 : i32
    return %c0_i32 : i32
  }
  func.func @transform_4(%arg0: i32) -> (i32, i32) {
    %c0_i32 = arith.constant 0 : i32
    %c0_i32_0 = arith.constant 0 : i32
    %c0_i32_1 = arith.constant 0 : i32
    return %c0_i32, %c0_i32_0 : i32, i32
  }
  func.func @transform_5(%arg0: i32) -> (i32, i32) {
    %c0_i32 = arith.constant 0 : i32
    %c0_i32_0 = arith.constant 0 : i32
    %c0_i32_1 = arith.constant 0 : i32
    return %c0_i32, %c0_i32_0 : i32, i32
  }
  func.func @transform_6(%arg0: i32) -> (i32, i32) {
    %c0_i32 = arith.constant 0 : i32
    %c0_i32_0 = arith.constant 0 : i32
    return %arg0, %c0_i32 : i32, i32
  }
}

</mosaic_0001>

<bundles_post_ra>
// kernel: tpu_custom_call.1
= control target key start
LH: loop header
LB: loop body
LE: loop exit
PB: predicated region body
PF: predicated region fallthrough
CT: control target
= control target key end

     0   :  { %11 = vsyncpa [#allocation3], 0  ;;  %s1512_s0 = inlined_call_operand.hbm [shape: f32[8,128], index: 0, kind: input, shape index: {}]   ;;  %s1513_s1 = inlined_call_operand.hbm [shape: bf16[128,640], index: 1, kind: input, shape index: {}]   ;;  %s1514_s2 = inlined_call_operand.vmem [shape: f32[5], index: 2, kind: input, shape index: {}]   ;;  %s1515_s3 = inlined_call_operand.vmem [shape: f32[5], index: 3, kind: input, shape index: {}]   ;;  %s1516_s4 = inlined_call_operand.hbm [shape: bf16[256,128], index: 4, kind: input, shape index: {}]   ;;  %s1517_s5 = inlined_call_operand.vmem [shape: f32[1,128], index: 5, kind: input, shape index: {}]   ;;  %s1518_s6 = inlined_call_operand.hbm [shape: f32[8,128], index: 6, kind: output, shape index: {}]  }
   0x1   :  { %12 = vsyncpa [#allocation7], 0 }
   0x2   :  { %13 = vsyncpa [#allocation5], 0 }
   0x3   :  { %14 = vsyncpa [#allocation10], 0 }
   0x4   :  { %15 = vsyncpa [#allocation4], 0  ;;  %s1334_s21 = smov [#allocation6]   ;;  %s1210_s25 = scalar_lea.hbm %s1513_s1, 5120 }
   0x5   :  { %s31_s22 = sshll.u32 %s1334_s21, 4  ;;  %p1211_p0 = scmp.ne.s32.totalorder %s1513_s1, %s1210_s25  ;;  %s32_s22 = int_to_ptr.vmem [resolvable:$true] %s31_s22 }
   0x6   :  { %p1214_p1 = scmp.lt.u32.totalorder %s1210_s25, %s1513_s1 }
   0x8   :  { %p1216_p2 = pnand %p1214_p1, %p1211_p0 }
   0xa   :  { %1219 = shalt.err (!%p1216_p2)
}
   0xb   :  { %s1220_s30 = scalar_lea.vmem %s32_s22, 5120  ;;  %p1225_p4 = scmp.lt.s32.totalorder %s32_s22, %s32_s22 }
   0xc   :  { %p1221_p3 = scmp.ne.s32.totalorder %s32_s22, %s1220_s30  ;;  %p1226_p5 = scmp.lt.s32.totalorder %s1220_s30, %s1220_s30 }
   0xe   :  { %p1227_p6 = por %p1226_p5, %p1225_p4 }
  0x10   :  { %p1228_p7 = pnand %p1227_p6, %p1221_p3 }
  0x12   :  { %1231 = shalt.err (!%p1228_p7)
}
  0x13   :  { %s1335_s7 = smov 320   ;;  %s1336_s8 = smov 20  }
  0x14   :  { %37 = dma.hbm_to_vmem [thread:$0]  %s1513_s1, 5120, %s32_s22, [#allocation7], %s1335_s7, %s1335_s7, %s1336_s8  }
  0x15   :  { %s1337_s11 = smov [#allocation2]   ;;  %s44_s15 = sshll.u32 %s1514_s2, 4  ;;  %s45_s15 = int_to_ptr.vmem [resolvable:$true] %s44_s15 }
  0x16   :  { %s22_s12 = sshll.u32 %s1337_s11, 4  ;;  %s1232_s18 = scalar_lea.hbm %s1512_s0, 128  ;;  %s23_s12 = int_to_ptr.vmem [resolvable:$true] %s22_s12 }
  0x17   :  { %p1233_p8 = scmp.ne.s32.totalorder %s1512_s0, %s1232_s18  ;;  %p1236_p9 = scmp.lt.u32.totalorder %s1232_s18, %s1512_s0 }
  0x19   :  { %p1238_p10 = pnand %p1236_p9, %p1233_p8 }
  0x1b   :  { %1241 = shalt.err (!%p1238_p10)
}
  0x1c   :  { %s1242_s1 = scalar_lea.vmem %s23_s12, 128  ;;  %p1247_p12 = scmp.lt.s32.totalorder %s23_s12, %s23_s12 }
  0x1d   :  { %p1243_p11 = scmp.ne.s32.totalorder %s23_s12, %s1242_s1  ;;  %p1248_p13 = scmp.lt.s32.totalorder %s1242_s1, %s1242_s1 }
  0x1f   :  { %p1249_p0 = por %p1248_p13, %p1247_p12 }
  0x21   :  { %p1250_p1 = pnand %p1249_p0, %p1243_p11 }
  0x23   :  { %1253 = shalt.err (!%p1250_p1)
}
  0x24   :  { %25 = dma.hbm_to_vmem [thread:$0]  %s1512_s0, 128, %s23_s12, [#allocation3]  }
  0x25   :  { %s54_s26 = sshll.u32 %s1515_s3, 4  ;;  %s1254_s27 = scalar_lea.vmem %s45_s15, 16  ;;  %s55_s26 = int_to_ptr.vmem [resolvable:$true] %s54_s26 }
  0x26   :  { %p1255_p2 = scmp.ne.s32.totalorder %s45_s15, %s1254_s27  ;;  %p1259_p3 = scmp.lt.s32.totalorder %s45_s15, %s45_s15 }
  0x27   :  { %p1260_p4 = scmp.lt.s32.totalorder %s1254_s27, %s1254_s27 }
  0x29   :  { %p1261_p5 = por %p1260_p4, %p1259_p3 }
  0x2b   :  { %p1262_p6 = pnand %p1261_p5, %p1255_p2 }
  0x2d   :  { %1265 = shalt.err (!%p1262_p6)
}
  0x2e   :  { %s1338_s28 = smov [#allocation8]   ;;  %s1266_s29 = scalar_lea.vmem %s55_s26, 16 }
  0x2f   :  { %47 = dma.vmem_to_smem %s45_s15, 16, %s1338_s28, [#allocation5]  }
  0x30   :  { %p1267_p7 = scmp.ne.s32.totalorder %s55_s26, %s1266_s29  ;;  %p1271_p8 = scmp.lt.s32.totalorder %s55_s26, %s55_s26 }
  0x31   :  { %p1272_p9 = scmp.lt.s32.totalorder %s1266_s29, %s1266_s29 }
  0x33   :  { %p1273_p10 = por %p1272_p9, %p1271_p8 }
  0x35   :  { %p1274_p11 = pnand %p1273_p10, %p1267_p7 }
  0x37   :  { %1277 = shalt.err (!%p1274_p11)
}
  0x38   :  { %s1339_s0 = smov [#allocation9]   ;;  %s1340_s3 = smov [#allocation11]  }
  0x39   :  { %57 = dma.vmem_to_smem %s55_s26, 16, %s1339_s0, [#allocation10]  }
  0x3a   :  { %s63_s30 = sshll.u32 %s1340_s3, 4  ;;  %s1278_s9 = scalar_lea.hbm %s1516_s4, 2048  ;;  %s64_s30 = int_to_ptr.vmem [resolvable:$true] %s63_s30 }
  0x3b   :  { %p1279_p12 = scmp.ne.s32.totalorder %s1516_s4, %s1278_s9  ;;  %p1282_p13 = scmp.lt.u32.totalorder %s1278_s9, %s1516_s4 }
  0x3d   :  { %p1284_p0 = pnand %p1282_p13, %p1279_p12 }
  0x3f   :  { %1287 = shalt.err (!%p1284_p0)
}
  0x40   :  { %s1288_s14 = scalar_lea.vmem %s64_s30, 2048  ;;  %p1293_p2 = scmp.lt.s32.totalorder %s64_s30, %s64_s30 }
  0x41   :  { %p1289_p1 = scmp.ne.s32.totalorder %s64_s30, %s1288_s14  ;;  %p1294_p3 = scmp.lt.s32.totalorder %s1288_s14, %s1288_s14 }
  0x43   :  { %p1295_p4 = por %p1294_p3, %p1293_p2 }
  0x45   :  { %p1296_p5 = pnand %p1295_p4, %p1289_p1 }
  0x47   :  { %1299 = shalt.err (!%p1296_p5)
}
  0x48   :  { %s1341_s15 = smov 64   ;;  %s1342_s16 = smov 4  }
  0x49   :  { %69 = dma.hbm_to_vmem [thread:$0]  %s1516_s4, 2048, %s64_s30, [#allocation7], %s1341_s15, %s1341_s15, %s1342_s16  }
  0x4a   :  { %1322 = dma.done.wait [#allocation3], 128  }
  0x4b   :  { %1323 = vsyncadd [#allocation3], 4294967168 }
  0x4c   :  { %1324 = dma.done.wait [#allocation7], 5120  }
  0x4d   :  { %1325 = vsyncadd [#allocation7], 4294962176 }
  0x4e   :  { %1326 = dma.done.wait [#allocation5], 16  }
  0x4f   :  { %1327 = vsyncadd [#allocation5], 4294967280 }
  0x50   :  { %1328 = dma.done.wait [#allocation10], 16  }
  0x51   :  { %1329 = vsyncadd [#allocation10], 4294967280 }
  0x52   :  { %1330 = dma.done.wait [#allocation7], 2048  }
  0x53   :  { %1331 = vsyncadd [#allocation7], 4294965248 }
  0x54   :  { %87 = sfence }
  0x55   :  { %v89_v0 = vld [vmem:[#allocation2] sm:$0xff]  ;;  %v1140_v1 = vld [vmem:[#allocation6] ss:$20 sps:$4 sm:$0xff]   ;;  %v1343_v3 = vmov 0.0   ;;  %v1144_v6 = vld [vmem:[#allocation6 + $0x50] ss:$20 sps:$4 sm:$0xff]   ;;  %v94_v10 = vlaneseq }
  0x56   :  { %90 = vadd.xlane.f32.xlu0 %v89_v0  ;;  %v1141_v2 = vld [vmem:[#allocation6 + $0x4] ss:$20 sps:$4 sm:$0xff]   ;;  %1028 = vmatprep.subr.bf16.mxu0 %v1343_v3  ;;  %v1142_v4 = vld [vmem:[#allocation6 + $0x28] ss:$20 sps:$4 sm:$0xff]   ;;  %v1143_v5 = vld [vmem:[#allocation6 + $0x2c] ss:$20 sps:$4 sm:$0xff]  }
  0x57   :  { %1048 = vmatprep.subr.bf16.mxu1 %v1343_v3  ;;  %1029 = vmatpush3.bf16.msra.mxu0 %v1140_v1  ;;  %v1145_v7 = vld [vmem:[#allocation6 + $0x54] ss:$20 sps:$4 sm:$0xff]   ;;  %v1146_v8 = vld [vmem:[#allocation6 + $0x78] ss:$20 sps:$4 sm:$0xff]   ;;  %v1147_v9 = vld [vmem:[#allocation6 + $0x7c] ss:$20 sps:$4 sm:$0xff]  }
  0x58   :  { %1049 = vmatpush3.bf16.msra.mxu1 %v1141_v2  ;;  %1030 = vmatprep.subr.bf16.mxu0 %v1343_v3  ;;  %v95_v11 = vand.u32 127, %v94_v10  ;;  %v1148_v17 = vld [vmem:[#allocation6 + $0xa0] ss:$20 sps:$4 sm:$0xff]   ;;  %v1149_v18 = vld [vmem:[#allocation6 + $0xa4] ss:$20 sps:$4 sm:$0xff]   ;;  %vm1344_vm1 = vmmov 0  }
  0x59   :  { %1050 = vmatprep.subr.bf16.mxu1 %v1343_v3  ;;  %v1150_v19 = vld [vmem:[#allocation6 + $0xc8] ss:$20 sps:$4 sm:$0xff]   ;;  %v1151_v20 = vld [vmem:[#allocation6 + $0xcc] ss:$20 sps:$4 sm:$0xff]   ;;  %v1152_v21 = vld [vmem:[#allocation6 + $0xf0] ss:$20 sps:$4 sm:$0xff]   ;;  %1044 = vmatprep.mubr.msk.bf16.mxu0 %vm1344_vm1, %v1343_v3 }
  0x5a   :  { %vm96_vm0 = vcmp.lt.s32.totalorder %v95_v11, 8  ;;  %v1153_v22 = vld [vmem:[#allocation6 + $0xf4] ss:$20 sps:$4 sm:$0xff]   ;;  %v1154_v23 = vld [vmem:[#allocation6 + $0x118] ss:$20 sps:$4 sm:$0xff]   ;;  %1064 = vmatprep.mubr.msk.bf16.mxu1 %vm1344_vm1, %v1343_v3  ;;  %v1180_v56 = vld [vmem:[#allocation11 + $0x40] sm:$0xff]  }
  0x5b   :  { %1031 = vmatpush3.bf16.msra.mxu0 %v1142_v4  ;;  %v1155_v24 = vld [vmem:[#allocation6 + $0x11c] ss:$20 sps:$4 sm:$0xff]   ;;  %v1157_v32 = vld [vmem:[#allocation6 + $0xc] ss:$20 sps:$4 sm:$0xff]   ;;  %v1159_v35 = vld [vmem:[#allocation6 + $0x34] ss:$20 sps:$4 sm:$0xff]  }
  0x5c   :  { %1051 = vmatpush3.bf16.msra.mxu1 %v1143_v5  ;;  %1032 = vmatprep.subr.bf16.mxu0 %v1343_v3  ;;  %v1156_v31 = vld [vmem:[#allocation6 + $0x8] ss:$20 sps:$4 sm:$0xff]   ;;  %v1158_v34 = vld [vmem:[#allocation6 + $0x30] ss:$20 sps:$4 sm:$0xff]   ;;  %v1160_v36 = vld [vmem:[#allocation6 + $0x58] ss:$20 sps:$4 sm:$0xff]  }
  0x5d   :  { %1052 = vmatprep.subr.bf16.mxu1 %v1343_v3  ;;  %v1161_v37 = vld [vmem:[#allocation6 + $0x5c] ss:$20 sps:$4 sm:$0xff]   ;;  %v1162_v38 = vld [vmem:[#allocation6 + $0x80] ss:$20 sps:$4 sm:$0xff]   ;;  %v1163_v39 = vld [vmem:[#allocation6 + $0x84] ss:$20 sps:$4 sm:$0xff]  }
  0x5e   :  { %v1164_v40 = vld [vmem:[#allocation6 + $0xa8] ss:$20 sps:$4 sm:$0xff]   ;;  %v1165_v41 = vld [vmem:[#allocation6 + $0xac] ss:$20 sps:$4 sm:$0xff]   ;;  %v1166_v42 = vld [vmem:[#allocation6 + $0xd0] ss:$20 sps:$4 sm:$0xff]  }
  0x5f   :  { %1033 = vmatpush3.bf16.msra.mxu0 %v1144_v6  ;;  %v1167_v43 = vld [vmem:[#allocation6 + $0xd4] ss:$20 sps:$4 sm:$0xff]   ;;  %v1168_v44 = vld [vmem:[#allocation6 + $0xf8] ss:$20 sps:$4 sm:$0xff]   ;;  %v1169_v45 = vld [vmem:[#allocation6 + $0xfc] ss:$20 sps:$4 sm:$0xff]  }
  0x60   :  { %1053 = vmatpush3.bf16.msra.mxu1 %v1145_v7  ;;  %1034 = vmatprep.subr.bf16.mxu0 %v1343_v3  ;;  %v1170_v46 = vld [vmem:[#allocation6 + $0x120] ss:$20 sps:$4 sm:$0xff]   ;;  %v1171_v47 = vld [vmem:[#allocation6 + $0x124] ss:$20 sps:$4 sm:$0xff]   ;;  %v1175_v51 = vld [vmem:[#allocation6 + $0x88] ss:$20 sps:$4 sm:$0xff]  }
  0x61   :  { %1054 = vmatprep.subr.bf16.mxu1 %v1343_v3  ;;  %v1172_v48 = vld [vmem:[#allocation6 + $0x10] ss:$20 sps:$4 sm:$0xff]   ;;  %v1173_v49 = vld [vmem:[#allocation6 + $0x38] ss:$20 sps:$4 sm:$0xff]   ;;  %v1174_v50 = vld [vmem:[#allocation6 + $0x60] ss:$20 sps:$4 sm:$0xff]  }
  0x62   :  { %v1176_v52 = vld [vmem:[#allocation6 + $0xb0] ss:$20 sps:$4 sm:$0xff]   ;;  %v1177_v53 = vld [vmem:[#allocation6 + $0xd8] ss:$20 sps:$4 sm:$0xff]   ;;  %v1178_v54 = vld [vmem:[#allocation6 + $0x100] ss:$20 sps:$4 sm:$0xff]  }
  0x63   :  { %1035 = vmatpush3.bf16.msra.mxu0 %v1146_v8  ;;  %v1179_v55 = vld [vmem:[#allocation6 + $0x128] ss:$20 sps:$4 sm:$0xff]   ;;  %v1181_v57 = vld [vmem:[#allocation11] sm:$0xff]   ;;  %v1184_v60 = vld [vmem:[#allocation11 + $0x50] sm:$0xff]   ;;  %s107_s4 = sld [smem:[#allocation8]]  ;;  %s896_s19 = sld [smem:[#allocation8 + $0x1]] }
  0x64   :  { %1055 = vmatpush3.bf16.msra.mxu1 %v1147_v9  ;;  %1036 = vmatprep.subr.bf16.mxu0 %v1343_v3  ;;  %v1182_v58 = vld [vmem:[#allocation11 + $0x48] sm:$0xff]   ;;  %v1185_v61 = vld [vmem:[#allocation11 + $0x10] sm:$0xff]   ;;  %v1186_v62 = vld [vmem:[#allocation11 + $0x58] sm:$0xff]   ;;  %s110_s20 = sld [smem:[#allocation9]]  ;;  %s897_s21 = sld [smem:[#allocation9 + $0x1]] }
  0x65   :  { %1056 = vmatprep.subr.bf16.mxu1 %v1343_v3  ;;  %v1183_v59 = vld [vmem:[#allocation11 + $0x8] sm:$0xff]   ;;  %v1187_v63 = vld [vmem:[#allocation11 + $0x18] sm:$0xff]   ;;  %v1189_v1 = vld [vmem:[#allocation11 + $0x20] sm:$0xff]   ;;  %s898_s23 = sld [smem:[#allocation8 + $0x2]]  ;;  %s900_s2 = sld [smem:[#allocation8 + $0x3]] }
  0x66   :  { %v1190_v2 = vld [vmem:[#allocation11 + $0x68] sm:$0xff]   ;;  %v1192_v4 = vld [vmem:[#allocation11 + $0x70] sm:$0xff]   ;;  %v1194_v6 = vld [vmem:[#allocation11 + $0x78] sm:$0xff]   ;;  %s899_s1 = sld [smem:[#allocation9 + $0x2]]  ;;  %s901_s22 = sld [smem:[#allocation9 + $0x3]] }
  0x67   :  { %1037 = vmatpush3.bf16.msra.mxu0 %v1148_v17  ;;  %v1193_v5 = vld [vmem:[#allocation11 + $0x30] sm:$0xff]   ;;  %v1195_v7 = vld [vmem:[#allocation11 + $0x38] sm:$0xff]   ;;  %s902_s24 = sld [smem:[#allocation8 + $0x4]]  ;;  %s1345_s28 = smov [#allocation12]  }
  0x68   :  { %1057 = vmatpush3.bf16.msra.mxu1 %v1149_v18  ;;  %1038 = vmatprep.subr.bf16.mxu0 %v1343_v3  ;;  %s903_s25 = sld [smem:[#allocation9 + $0x4]]  ;;  %s884_s29 = sshll.u32 %s1345_s28, 4  ;;  %s885_s29 = int_to_ptr.vmem [resolvable:$true] %s884_s29 }
  0x69   :  { %1058 = vmatprep.subr.bf16.mxu1 %v1343_v3  ;;  %v108_v8 = vstv %s107_s4  ;;  %v114_v9 = vstv %s896_s19  ;;  %s1300_s0 = scalar_lea.vmem %s885_s29, 128  ;;  %p1305_p7 = scmp.lt.s32.totalorder %s885_s29, %s885_s29 }
  0x6a   :  { %p1301_p6 = scmp.ne.s32.totalorder %s885_s29, %s1300_s0  ;;  %p1306_p8 = scmp.lt.s32.totalorder %s1300_s0, %s1300_s0 }
  0x6b   :  { %1039 = vmatpush3.bf16.msra.mxu0 %v1150_v19 }
  0x6c   :  { %1059 = vmatpush3.bf16.msra.mxu1 %v1151_v20  ;;  %1040 = vmatprep.subr.bf16.mxu0 %v1343_v3  ;;  %v124_v19 = vstv %s899_s1  ;;  %v128_v20 = vstv %s900_s2  ;;  %p1307_p9 = por %p1306_p8, %p1305_p7 }
  0x6d   :  { %1060 = vmatprep.subr.bf16.mxu1 %v1343_v3 }
  0x6e   :  { %p1308_p10 = pnand %p1307_p9, %p1301_p6 }
  0x6f   :  { %1041 = vmatpush3.bf16.msra.mxu0 %v1152_v21 }
  0x70   :  { %1061 = vmatpush3.bf16.msra.mxu1 %v1153_v22  ;;  %1042 = vmatprep.subr.bf16.mxu0 %v1343_v3 }
  0x71   :  { %1062 = vmatprep.subr.bf16.mxu1 %v1343_v3 }
  0x73   :  { %1043 = vmatpush3.bf16.msra.mxu0 %v1154_v23 }
  0x74   :  { %1063 = vmatpush3.bf16.msra.mxu1 %v1155_v24  ;;  %1068 = vmatprep.subr.bf16.mxu0 %v1343_v3  ;;  %v131_v24 = vstv %s901_s22 }
  0x75   :  { %1088 = vmatprep.subr.bf16.mxu1 %v1343_v3 }
  0xe3   :  { %v91_v12 = vpop.xlane.xlu0 %90 }
  0xe4   :  { %v1433_v13 = vmul.f32 0.125, %v91_v12  ;;  %v111_v12 = vstv %s110_s20 }
  0xe6   :  { %v93_v14 = vsub.f32 %v89_v0, %v1433_v13  ;;  %v1188_v0 = vld [vmem:[#allocation11 + $0x60] sm:$0xff]  }
  0xe8   :  { %v97_v15 = vsel %vm96_vm0, %v93_v14, 0.0  ;;  %v117_v14 = vstv %s897_s21 }
  0xe9   :  { %v98_v16 = vmul.f32 %v97_v15, %v97_v15 }
  0xeb   :  { %99 = vadd.xlane.f32.xlu0 %v98_v16 }
 0x178   :  { %v100_v25 = vpop.xlane.xlu0 %99 }
 0x179   :  { %v101_v26 = vmul.f32 0.125, %v100_v25  ;;  %v135_v25 = vstv %s902_s24 }
 0x17b   :  { %v102_v27 = vadd.f32 1e-05, %v101_v26 }
 0x17d   :  { %1196 = vrsqrt.f32 %v102_v27 }
 0x187   :  { %v1197_v28 = vpop.eup %1196 }
 0x188   :  { %v1448_v29 = vmul.f32 %v1197_v28, %v102_v27  ;;  %v1450_v30 = vmul.f32 %v1197_v28, %v97_v15  ;;  %v121_v15 = vstv %s898_s23 }
 0x18a   :  { %v1454_v33 = vpack.c.bf16 %v1450_v30, %v1450_v30  ;;  %v109_v10 = vmul.f32 %v108_v8, %v1450_v30  ;;  %v115_v11 = vmul.f32 %v114_v9, %v1450_v30  ;;  %v122_v18 = vmul.f32 %v121_v15, %v1450_v30 }
 0x18b   :  { %v129_v23 = vmul.f32 %v128_v20, %v1450_v30  ;;  %v136_v28 = vmul.f32 %v135_v25, %v1450_v30 }
 0x18c   :  { %1045 = vmatmul.mubr.bf16.vlgmr.msra.gmra.mrb[0].mxu0 %v1454_v33  ;;  %1065 = vmatmul.mubr.bf16.vlgmr.msra.gmra.mrb[0].mxu1 %v1454_v33  ;;  %v112_v16 = vadd.f32 %v111_v12, %v109_v10  ;;  %v118_v17 = vadd.f32 %v117_v14, %v115_v11  ;;  %v125_v22 = vadd.f32 %v124_v19, %v122_v18 }
 0x18d   :  { %1069 = vmatpush3.bf16.msra.mxu0 %v1156_v31  ;;  %1089 = vmatpush3.bf16.msra.mxu1 %v1157_v32  ;;  %v132_v27 = vadd.f32 %v131_v24, %v129_v23  ;;  %v138_v31 = vstv %s903_s25 }
 0x18e   :  { %1070 = vmatprep.subr.bf16.mxu0 %v1343_v3  ;;  %1090 = vmatprep.subr.bf16.mxu1 %v1343_v3  ;;  %v119_v21 = vmax.f32 %v112_v16, %v118_v17 }
 0x18f   :  { %1084 = vmatprep.mubr.msk.bf16.mxu0 %vm1344_vm1, %v1343_v3  ;;  %1104 = vmatprep.mubr.msk.bf16.mxu1 %vm1344_vm1, %v1343_v3 }
 0x190   :  { %v126_v26 = vmax.f32 %v119_v21, %v125_v22 }
 0x191   :  { %1071 = vmatpush3.bf16.msra.mxu0 %v1158_v34  ;;  %1091 = vmatpush3.bf16.msra.mxu1 %v1159_v35 }
 0x192   :  { %1072 = vmatprep.subr.bf16.mxu0 %v1343_v3  ;;  %1092 = vmatprep.subr.bf16.mxu1 %v1343_v3  ;;  %v133_v32 = vmax.f32 %v126_v26, %v132_v27 }
 0x195   :  { %1073 = vmatpush3.bf16.msra.mxu0 %v1160_v36  ;;  %1093 = vmatpush3.bf16.msra.mxu1 %v1161_v37 }
 0x196   :  { %1074 = vmatprep.subr.bf16.mxu0 %v1343_v3  ;;  %1094 = vmatprep.subr.bf16.mxu1 %v1343_v3 }
 0x199   :  { %1075 = vmatpush3.bf16.msra.mxu0 %v1162_v38  ;;  %1095 = vmatpush3.bf16.msra.mxu1 %v1163_v39 }
 0x19a   :  { %1076 = vmatprep.subr.bf16.mxu0 %v1343_v3  ;;  %1096 = vmatprep.subr.bf16.mxu1 %v1343_v3 }
 0x19d   :  { %1077 = vmatpush3.bf16.msra.mxu0 %v1164_v40  ;;  %1097 = vmatpush3.bf16.msra.mxu1 %v1165_v41 }
 0x19e   :  { %1078 = vmatprep.subr.bf16.mxu0 %v1343_v3  ;;  %1098 = vmatprep.subr.bf16.mxu1 %v1343_v3 }
 0x1a1   :  { %1079 = vmatpush3.bf16.msra.mxu0 %v1166_v42  ;;  %1099 = vmatpush3.bf16.msra.mxu1 %v1167_v43 }
 0x1a2   :  { %1080 = vmatprep.subr.bf16.mxu0 %v1343_v3  ;;  %1100 = vmatprep.subr.bf16.mxu1 %v1343_v3 }
 0x1a5   :  { %1081 = vmatpush3.bf16.msra.mxu0 %v1168_v44  ;;  %1101 = vmatpush3.bf16.msra.mxu1 %v1169_v45 }
 0x1a6   :  { %1082 = vmatprep.subr.bf16.mxu0 %v1343_v3  ;;  %1102 = vmatprep.subr.bf16.mxu1 %v1343_v3 }
 0x1a9   :  { %1083 = vmatpush3.bf16.msra.mxu0 %v1170_v46  ;;  %1103 = vmatpush3.bf16.msra.mxu1 %v1171_v47 }
 0x1aa   :  { %1108 = vmatprep.subr.bf16.mxu0 %v1343_v3  ;;  %1006 = vmatprep.subr.bf16.mxu1 %v1180_v56 }
 0x1ac   :  { %1085 = vmatmul.mubr.bf16.vlgmr.msra.gmra.mrb[4].mxu0 %v1454_v33  ;;  %1105 = vmatmul.mubr.bf16.vlgmr.msra.gmra.mrb[4].mxu1 %v1454_v33 }
 0x1ad   :  { %1109 = vmatpush3.bf16.msra.mxu0 %v1172_v48  ;;  %1124 = vmatprep.mubr.msk.bf16.mxu0 %vm1344_vm1, %v1343_v3 }
 0x1ae   :  { %1110 = vmatprep.subr.bf16.mxu0 %v1343_v3  ;;  %1007 = vmatpush3.bf16.msra.mxu1 %v1181_v57 }
 0x1af   :  { %1008 = vmatprep.subr.bf16.mxu1 %v1182_v58 }
 0x1b1   :  { %1111 = vmatpush3.bf16.msra.mxu0 %v1173_v49 }
 0x1b2   :  { %1112 = vmatprep.subr.bf16.mxu0 %v1343_v3  ;;  %1009 = vmatpush3.bf16.msra.mxu1 %v1183_v59 }
 0x1b3   :  { %1010 = vmatprep.subr.bf16.mxu1 %v1184_v60 }
 0x1b5   :  { %1113 = vmatpush3.bf16.msra.mxu0 %v1174_v50 }
 0x1b6   :  { %1114 = vmatprep.subr.bf16.mxu0 %v1343_v3  ;;  %1011 = vmatpush3.bf16.msra.mxu1 %v1185_v61 }
 0x1b7   :  { %1012 = vmatprep.subr.bf16.mxu1 %v1186_v62 }
 0x1b9   :  { %1115 = vmatpush3.bf16.msra.mxu0 %v1175_v51 }
 0x1ba   :  { %1116 = vmatprep.subr.bf16.mxu0 %v1343_v3  ;;  %1013 = vmatpush3.bf16.msra.mxu1 %v1187_v63 }
 0x1bb   :  { %1014 = vmatprep.subr.bf16.mxu1 %v1188_v0 }
 0x1bd   :  { %1117 = vmatpush3.bf16.msra.mxu0 %v1176_v52 }
 0x1be   :  { %1118 = vmatprep.subr.bf16.mxu0 %v1343_v3  ;;  %1015 = vmatpush3.bf16.msra.mxu1 %v1189_v1 }
 0x1bf   :  { %1016 = vmatprep.subr.bf16.mxu1 %v1190_v2 }
 0x1c1   :  { %1119 = vmatpush3.bf16.msra.mxu0 %v1177_v53 }
 0x1c2   :  { %1120 = vmatprep.subr.bf16.mxu0 %v1343_v3 }
 0x1c5   :  { %1121 = vmatpush3.bf16.msra.mxu0 %v1178_v54 }
 0x1c6   :  { %1122 = vmatprep.subr.bf16.mxu0 %v1343_v3  ;;  %v1191_v3 = vld [vmem:[#allocation11 + $0x28] sm:$0xff]  }
 0x1c7   :  { %1017 = vmatpush3.bf16.msra.mxu1 %v1191_v3 }
 0x1c8   :  { %1018 = vmatprep.subr.bf16.mxu1 %v1192_v4 }
 0x1c9   :  { %1123 = vmatpush3.bf16.msra.mxu0 %v1179_v55 }
 0x1cb   :  { %1019 = vmatpush3.bf16.msra.mxu1 %v1193_v5 }
 0x1cc   :  { %1125 = vmatmul.mubr.bf16.vlgmr.msra.gmra.mrb[8].mxu0 %v1454_v33  ;;  %1020 = vmatprep.subr.bf16.mxu1 %v1194_v6  ;;  %v139_v33 = vadd.f32 %v138_v31, %v136_v28 }
 0x1ce   :  { %v140_v34 = vmax.f32 %v133_v32, %v139_v33  ;;  %v960_v32 = vld [vmem:[%s1517_s5] ss:$0 sm:$0xff] }
 0x1cf   :  { %1021 = vmatpush3.bf16.msra.mxu1 %v1195_v7 }
 0x1d0   :  { %v245_v35 = vsub.f32 %v112_v16, %v140_v34  ;;  %v355_v36 = vsub.f32 %v118_v17, %v140_v34  ;;  %v465_v52 = vsub.f32 %v125_v22, %v140_v34  ;;  %v575_v53 = vsub.f32 %v132_v27, %v140_v34 }
 0x1d1   :  { %v685_v5 = vsub.f32 %v139_v33, %v140_v34 }
 0x1d2   :  { %v246_v37 = vmul.f32 1.442695, %v245_v35  ;;  %v356_v38 = vmul.f32 1.442695, %v355_v36  ;;  %v466_v54 = vmul.f32 1.442695, %v465_v52 }
 0x1d3   :  { %v576_v55 = vmul.f32 1.442695, %v575_v53  ;;  %v686_v7 = vmul.f32 1.442695, %v685_v5 }
 0x1d4   :  { %1198 = vpow2.f32 %v246_v37 }
 0x1d5   :  { %1200 = vpow2.f32 %v356_v38 }
 0x1d6   :  { %1202 = vpow2.f32 %v466_v54 }
 0x1d7   :  { %1204 = vpow2.f32 %v576_v55 }
 0x1d8   :  { %1206 = vpow2.f32 %v686_v7 }
 0x1de   :  { %v1199_v39 = vpop.eup %1198 }
 0x1df   :  { %v1201_v40 = vpop.eup %1200 }
 0x1e0   :  { %v1203_v56 = vpop.eup %1202  ;;  %v358_v8 = vadd.f32 %v1201_v40, %v1199_v39 }
 0x1e1   :  { %v1205_v62 = vpop.eup %1204 }
 0x1e2   :  { %v468_v9 = vadd.f32 %v1203_v56, %v358_v8  ;;  %v1207_v11 = vpop.eup %1206 }
 0x1e4   :  { %v578_v10 = vadd.f32 %v1205_v62, %v468_v9 }
 0x1e6   :  { %v688_v12 = vadd.f32 %v1207_v11, %v578_v10 }
 0x1e8   :  { %1208 = vrcp.f32 %v688_v12 }
 0x1f2   :  { %v1209_v20 = vpop.eup %1208 }
 0x25f   :  { %v239_v41 = vpop.f32.mrb[0].mxu0  ;;  %v349_v42 = vpop.f32.mrb[0].mxu1 }
 0x260   :  { %v249_v43 = vmul.f32 %v1199_v39, %v239_v41  ;;  %v359_v44 = vmul.f32 %v1201_v40, %v349_v42  ;;  %v1046_v45 = vpop.f32.mrb[1].mxu0  ;;  %v1066_v46 = vpop.f32.mrb[1].mxu1 }
 0x261   :  { %v242_v47 = vpop.f32.mrb[2].mxu0  ;;  %v352_v48 = vpop.f32.mrb[2].mxu1 }
 0x262   :  { %v360_v49 = vadd.f32 %v359_v44, %v249_v43  ;;  %v1047_v50 = vpop.f32.mrb[3].mxu0  ;;  %v1067_v51 = vpop.f32.mrb[3].mxu1 }
 0x27f   :  { %v459_v57 = vpop.f32.mrb[4].mxu0  ;;  %v569_v58 = vpop.f32.mrb[4].mxu1 }
 0x280   :  { %v469_v59 = vmul.f32 %v1203_v56, %v459_v57  ;;  %v1086_v60 = vpop.f32.mrb[5].mxu0  ;;  %v1106_v61 = vpop.f32.mrb[5].mxu1  ;;  %v579_v2 = vmul.f32 %v1205_v62, %v569_v58 }
 0x281   :  { %v462_v63 = vpop.f32.mrb[6].mxu0  ;;  %v572_v0 = vpop.f32.mrb[6].mxu1 }
 0x282   :  { %v470_v1 = vadd.f32 %v469_v59, %v360_v49  ;;  %v1087_v3 = vpop.f32.mrb[7].mxu0  ;;  %v1107_v4 = vpop.f32.mrb[7].mxu1 }
 0x284   :  { %v580_v6 = vadd.f32 %v579_v2, %v470_v1 }
 0x29f   :  { %v679_v14 = vpop.f32.mrb[8].mxu0 }
 0x2a0   :  { %v689_v15 = vmul.f32 %v1207_v11, %v679_v14  ;;  %v1126_v16 = vpop.f32.mrb[9].mxu0 }
 0x2a1   :  { %v682_v17 = vpop.f32.mrb[10].mxu0 }
 0x2a2   :  { %v690_v18 = vadd.f32 %v689_v15, %v580_v6  ;;  %v1127_v19 = vpop.f32.mrb[11].mxu0 }
 0x2a4   :  { %v692_v21 = vmul.f32 %v1209_v20, %v690_v18 }
 0x2a6   :  { %v693_v22 = vsub.f32 %v1450_v30, %v692_v21  ;;  %v694_v24 = vpack.c.bf16 %v692_v21, %v692_v21 }
 0x2a8   :  { %v695_v23 = vpack.c.bf16 %v693_v22, %v693_v22 }
 0x2aa   :  { %856 = vmatprep.mubr.bf16.mxu1 %v695_v23 }
 0x2ab   :  { %857 = vmatmul.mubr.bf16.vlgmr.msra.gmra.mrb[8].mxu1 %v694_v24 }
 0x37e   :  { %v1022_v25 = vpop.f32.mrb[8].mxu1 }
 0x37f   :  { %v1023_v26 = vpop.f32.mrb[9].mxu1 }
 0x380   :  { %v1025_v27 = vpop.f32.mrb[10].mxu1  ;;  %v1024_v28 = vadd.f32 %v1023_v26, %v1022_v25 }
 0x381   :  { %v1026_v31 = vpop.f32.mrb[11].mxu1 }
 0x382   :  { %864 = vadd.xlane.f32.xlu1 %v1024_v28 }
 0x40f   :  { %v865_v33 = vpop.xlane.xlu1 %864 }
 0x410   :  { %v866_v34 = vmul.f32 0.0625, %v865_v33 }
 0x412   :  { %v874_v35 = vadd.f32 %v960_v32, %v866_v34 }
 0x414   :  { %v875_v30 = vmul.f32 %v874_v35, %v1448_v29 }
 0x416   :  { %v876_v36 = vadd.f32 %v875_v30, %v1433_v13 }
 0x418   :  { %877 = vst [vmem:[#allocation12] sm:$0xff] %v876_v36 }
 0x419   :  { %1311 = shalt.err (!%p1308_p10)
}
 0x41a   :  { %s1312_s30 = scalar_lea.hbm %s1518_s6, 128 }
 0x41b   :  { %p1313_p11 = scmp.ne.s32.totalorder %s1518_s6, %s1312_s30  ;;  %p1316_p12 = scmp.lt.u32.totalorder %s1312_s30, %s1518_s6 }
 0x41d   :  { %p1318_p13 = pnand %p1316_p12, %p1313_p11 }
 0x41f   :  { %1321 = shalt.err (!%p1318_p13)
}
 0x420   :  { %887 = dma.vmem_to_hbm [thread:$0]  %s885_s29, 128, %s1518_s6, [#allocation4]  }
 0x421   :  { %1332 = dma.done.wait [#allocation4], 128  }
 0x422   :  { %1333 = vsyncadd [#allocation4], 4294967168 }
 0x423   :  { %891 = vsyncpa [#allocation3], 1 }
 0x424   :  { %892 = vsyncpa [#allocation7], 1 }
 0x425   :  { %893 = vsyncpa [#allocation4], 1 }
 0x426   :  { %894 = vsyncpa [#allocation5], 1 }
 0x427   :  { %895 = vsyncpa [#allocation10], 1 }

// kernel: tpu_custom_call.1
= control target key start
LH: loop header
LB: loop body
LE: loop exit
PB: predicated region body
PF: predicated region fallthrough
CT: control target
= control target key end

     0   :  { %11 = vsyncpa [#allocation3], 0  ;;  %s1512_s0 = inlined_call_operand.hbm [shape: f32[8,128], index: 0, kind: input, shape index: {}]   ;;  %s1513_s1 = inlined_call_operand.hbm [shape: bf16[128,640], index: 1, kind: input, shape index: {}]   ;;  %s1514_s2 = inlined_call_operand.vmem [shape: f32[5], index: 2, kind: input, shape index: {}]   ;;  %s1515_s3 = inlined_call_operand.vmem [shape: f32[5], index: 3, kind: input, shape index: {}]   ;;  %s1516_s4 = inlined_call_operand.hbm [shape: bf16[256,128], index: 4, kind: input, shape index: {}]   ;;  %s1517_s5 = inlined_call_operand.vmem [shape: f32[1,128], index: 5, kind: input, shape index: {}]   ;;  %s1518_s6 = inlined_call_operand.hbm [shape: f32[8,128], index: 6, kind: output, shape index: {}]  }
   0x1   :  { %12 = vsyncpa [#allocation7], 0 }
   0x2   :  { %13 = vsyncpa [#allocation5], 0 }
   0x3   :  { %14 = vsyncpa [#allocation10], 0 }
   0x4   :  { %15 = vsyncpa [#allocation4], 0  ;;  %s1334_s21 = smov [#allocation6]   ;;  %s1210_s25 = scalar_lea.hbm %s1513_s1, 5120 }
   0x5   :  { %s31_s22 = sshll.u32 %s1334_s21, 4  ;;  %p1211_p0 = scmp.ne.s32.totalorder %s1513_s1, %s1210_s25  ;;  %s32_s22 = int_to_ptr.vmem [resolvable:$true] %s31_s22 }
   0x6   :  { %p1214_p1 = scmp.lt.u32.totalorder %s1210_s25, %s1513_s1 }
   0x8   :  { %p1216_p2 = pnand %p1214_p1, %p1211_p0 }
   0xa   :  { %1219 = shalt.err (!%p1216_p2)
}
   0xb   :  { %s1220_s30 = scalar_lea.vmem %s32_s22, 5120  ;;  %p1225_p4 = scmp.lt.s32.totalorder %s32_s22, %s32_s22 }
   0xc   :  { %p1221_p3 = scmp.ne.s32.totalorder %s32_s22, %s1220_s30  ;;  %p1226_p5 = scmp.lt.s32.totalorder %s1220_s30, %s1220_s30 }
   0xe   :  { %p1227_p6 = por %p1226_p5, %p1225_p4 }
  0x10   :  { %p1228_p7 = pnand %p1227_p6, %p1221_p3 }
  0x12   :  { %1231 = shalt.err (!%p1228_p7)
}
  0x13   :  { %s1335_s7 = smov 320   ;;  %s1336_s8 = smov 20  }
  0x14   :  { %37 = dma.hbm_to_vmem [thread:$0]  %s1513_s1, 5120, %s32_s22, [#allocation7], %s1335_s7, %s1335_s7, %s1336_s8  }
  0x15   :  { %s1337_s11 = smov [#allocation2]   ;;  %s44_s15 = sshll.u32 %s1514_s2, 4  ;;  %s45_s15 = int_to_ptr.vmem [resolvable:$true] %s44_s15 }
  0x16   :  { %s22_s12 = sshll.u32 %s1337_s11, 4  ;;  %s1232_s18 = scalar_lea.hbm %s1512_s0, 128  ;;  %s23_s12 = int_to_ptr.vmem [resolvable:$true] %s22_s12 }
  0x17   :  { %p1233_p8 = scmp.ne.s32.totalorder %s1512_s0, %s1232_s18  ;;  %p1236_p9 = scmp.lt.u32.totalorder %s1232_s18, %s1512_s0 }
  0x19   :  { %p1238_p10 = pnand %p1236_p9, %p1233_p8 }
  0x1b   :  { %1241 = shalt.err (!%p1238_p10)
}
  0x1c   :  { %s1242_s1 = scalar_lea.vmem %s23_s12, 128  ;;  %p1247_p12 = scmp.lt.s32.totalorder %s23_s12, %s23_s12 }
  0x1d   :  { %p1243_p11 = scmp.ne.s32.totalorder %s23_s12, %s1242_s1  ;;  %p1248_p13 = scmp.lt.s32.totalorder %s1242_s1, %s1242_s1 }
  0x1f   :  { %p1249_p0 = por %p1248_p13, %p1247_p12 }
  0x21   :  { %p1250_p1 = pnand %p1249_p0, %p1243_p11 }
  0x23   :  { %1253 = shalt.err (!%p1250_p1)
}
  0x24   :  { %25 = dma.hbm_to_vmem [thread:$0]  %s1512_s0, 128, %s23_s12, [#allocation3]  }
  0x25   :  { %s54_s26 = sshll.u32 %s1515_s3, 4  ;;  %s1254_s27 = scalar_lea.vmem %s45_s15, 16  ;;  %s55_s26 = int_to_ptr.vmem [resolvable:$true] %s54_s26 }
  0x26   :  { %p1255_p2 = scmp.ne.s32.totalorder %s45_s15, %s1254_s27  ;;  %p1259_p3 = scmp.lt.s32.totalorder %s45_s15, %s45_s15 }
  0x27   :  { %p1260_p4 = scmp.lt.s32.totalorder %s1254_s27, %s1254_s27 }
  0x29   :  { %p1261_p5 = por %p1260_p4, %p1259_p3 }
  0x2b   :  { %p1262_p6 = pnand %p1261_p5, %p1255_p2 }
  0x2d   :  { %1265 = shalt.err (!%p1262_p6)
}
  0x2e   :  { %s1338_s28 = smov [#allocation8]   ;;  %s1266_s29 = scalar_lea.vmem %s55_s26, 16 }
  0x2f   :  { %47 = dma.vmem_to_smem %s45_s15, 16, %s1338_s28, [#allocation5]  }
  0x30   :  { %p1267_p7 = scmp.ne.s32.totalorder %s55_s26, %s1266_s29  ;;  %p1271_p8 = scmp.lt.s32.totalorder %s55_s26, %s55_s26 }
  0x31   :  { %p1272_p9 = scmp.lt.s32.totalorder %s1266_s29, %s1266_s29 }
  0x33   :  { %p1273_p10 = por %p1272_p9, %p1271_p8 }
  0x35   :  { %p1274_p11 = pnand %p1273_p10, %p1267_p7 }
  0x37   :  { %1277 = shalt.err (!%p1274_p11)
}
  0x38   :  { %s1339_s0 = smov [#allocation9]   ;;  %s1340_s3 = smov [#allocation11]  }
  0x39   :  { %57 = dma.vmem_to_smem %s55_s26, 16, %s1339_s0, [#allocation10]  }
  0x3a   :  { %s63_s30 = sshll.u32 %s1340_s3, 4  ;;  %s1278_s9 = scalar_lea.hbm %s1516_s4, 2048  ;;  %s64_s30 = int_to_ptr.vmem [resolvable:$true] %s63_s30 }
  0x3b   :  { %p1279_p12 = scmp.ne.s32.totalorder %s1516_s4, %s1278_s9  ;;  %p1282_p13 = scmp.lt.u32.totalorder %s1278_s9, %s1516_s4 }
  0x3d   :  { %p1284_p0 = pnand %p1282_p13, %p1279_p12 }
  0x3f   :  { %1287 = shalt.err (!%p1284_p0)
}
  0x40   :  { %s1288_s14 = scalar_lea.vmem %s64_s30, 2048  ;;  %p1293_p2 = scmp.lt.s32.totalorder %s64_s30, %s64_s30 }
  0x41   :  { %p1289_p1 = scmp.ne.s32.totalorder %s64_s30, %s1288_s14  ;;  %p1294_p3 = scmp.lt.s32.totalorder %s1288_s14, %s1288_s14 }
  0x43   :  { %p1295_p4 = por %p1294_p3, %p1293_p2 }
  0x45   :  { %p1296_p5 = pnand %p1295_p4, %p1289_p1 }
  0x47   :  { %1299 = shalt.err (!%p1296_p5)
}
  0x48   :  { %s1341_s15 = smov 64   ;;  %s1342_s16 = smov 4  }
  0x49   :  { %69 = dma.hbm_to_vmem [thread:$0]  %s1516_s4, 2048, %s64_s30, [#allocation7], %s1341_s15, %s1341_s15, %s1342_s16  }
  0x4a   :  { %1322 = dma.done.wait [#allocation3], 128  }
  0x4b   :  { %1323 = vsyncadd [#allocation3], 4294967168 }
  0x4c   :  { %1324 = dma.done.wait [#allocation7], 5120  }
  0x4d   :  { %1325 = vsyncadd [#allocation7], 4294962176 }
  0x4e   :  { %1326 = dma.done.wait [#allocation5], 16  }
  0x4f   :  { %1327 = vsyncadd [#allocation5], 4294967280 }
  0x50   :  { %1328 = dma.done.wait [#allocation10], 16  }
  0x51   :  { %1329 = vsyncadd [#allocation10], 4294967280 }
  0x52   :  { %1330 = dma.done.wait [#allocation7], 2048  }
  0x53   :  { %1331 = vsyncadd [#allocation7], 4294965248 }
  0x54   :  { %87 = sfence }
  0x55   :  { %v89_v0 = vld [vmem:[#allocation2] sm:$0xff]  ;;  %v1140_v1 = vld [vmem:[#allocation6] ss:$20 sps:$4 sm:$0xff]   ;;  %v1343_v3 = vmov 0.0   ;;  %v1144_v6 = vld [vmem:[#allocation6 + $0x50] ss:$20 sps:$4 sm:$0xff]   ;;  %v94_v10 = vlaneseq }
  0x56   :  { %90 = vadd.xlane.f32.xlu0 %v89_v0  ;;  %v1141_v2 = vld [vmem:[#allocation6 + $0x4] ss:$20 sps:$4 sm:$0xff]   ;;  %1028 = vmatprep.subr.bf16.mxu0 %v1343_v3  ;;  %v1142_v4 = vld [vmem:[#allocation6 + $0x28] ss:$20 sps:$4 sm:$0xff]   ;;  %v1143_v5 = vld [vmem:[#allocation6 + $0x2c] ss:$20 sps:$4 sm:$0xff]  }
  0x57   :  { %1048 = vmatprep.subr.bf16.mxu1 %v1343_v3  ;;  %1029 = vmatpush3.bf16.msra.mxu0 %v1140_v1  ;;  %v1145_v7 = vld [vmem:[#allocation6 + $0x54] ss:$20 sps:$4 sm:$0xff]   ;;  %v1146_v8 = vld [vmem:[#allocation6 + $0x78] ss:$20 sps:$4 sm:$0xff]   ;;  %v1147_v9 = vld [vmem:[#allocation6 + $0x7c] ss:$20 sps:$4 sm:$0xff]  }
  0x58   :  { %1049 = vmatpush3.bf16.msra.mxu1 %v1141_v2  ;;  %1030 = vmatprep.subr.bf16.mxu0 %v1343_v3  ;;  %v95_v11 = vand.u32 127, %v94_v10  ;;  %v1148_v17 = vld [vmem:[#allocation6 + $0xa0] ss:$20 sps:$4 sm:$0xff]   ;;  %v1149_v18 = vld [vmem:[#allocation6 + $0xa4] ss:$20 sps:$4 sm:$0xff]   ;;  %vm1344_vm1 = vmmov 0  }
  0x59   :  { %1050 = vmatprep.subr.bf16.mxu1 %v1343_v3  ;;  %v1150_v19 = vld [vmem:[#allocation6 + $0xc8] ss:$20 sps:$4 sm:$0xff]   ;;  %v1151_v20 = vld [vmem:[#allocation6 + $0xcc] ss:$20 sps:$4 sm:$0xff]   ;;  %v1152_v21 = vld [vmem:[#allocation6 + $0xf0] ss:$20 sps:$4 sm:$0xff]   ;;  %1044 = vmatprep.mubr.msk.bf16.mxu0 %vm1344_vm1, %v1343_v3 }
  0x5a   :  { %vm96_vm0 = vcmp.lt.s32.totalorder %v95_v11, 8  ;;  %v1153_v22 = vld [vmem:[#allocation6 + $0xf4] ss:$20 sps:$4 sm:$0xff]   ;;  %v1154_v23 = vld [vmem:[#allocation6 + $0x118] ss:$20 sps:$4 sm:$0xff]   ;;  %1064 = vmatprep.mubr.msk.bf16.mxu1 %vm1344_vm1, %v1343_v3  ;;  %v1180_v56 = vld [vmem:[#allocation11 + $0x40] sm:$0xff]  }
  0x5b   :  { %1031 = vmatpush3.bf16.msra.mxu0 %v1142_v4  ;;  %v1155_v24 = vld [vmem:[#allocation6 + $0x11c] ss:$20 sps:$4 sm:$0xff]   ;;  %v1157_v32 = vld [vmem:[#allocation6 + $0xc] ss:$20 sps:$4 sm:$0xff]   ;;  %v1159_v35 = vld [vmem:[#allocation6 + $0x34] ss:$20 sps:$4 sm:$0xff]  }
  0x5c   :  { %1051 = vmatpush3.bf16.msra.mxu1 %v1143_v5  ;;  %1032 = vmatprep.subr.bf16.mxu0 %v1343_v3  ;;  %v1156_v31 = vld [vmem:[#allocation6 + $0x8] ss:$20 sps:$4 sm:$0xff]   ;;  %v1158_v34 = vld [vmem:[#allocation6 + $0x30] ss:$20 sps:$4 sm:$0xff]   ;;  %v1160_v36 = vld [vmem:[#allocation6 + $0x58] ss:$20 sps:$4 sm:$0xff]  }
  0x5d   :  { %1052 = vmatprep.subr.bf16.mxu1 %v1343_v3  ;;  %v1161_v37 = vld [vmem:[#allocation6 + $0x5c] ss:$20 sps:$4 sm:$0xff]   ;;  %v1162_v38 = vld [vmem:[#allocation6 + $0x80] ss:$20 sps:$4 sm:$0xff]   ;;  %v1163_v39 = vld [vmem:[#allocation6 + $0x84] ss:$20 sps:$4 sm:$0xff]  }
  0x5e   :  { %v1164_v40 = vld [vmem:[#allocation6 + $0xa8] ss:$20 sps:$4 sm:$0xff]   ;;  %v1165_v41 = vld [vmem:[#allocation6 + $0xac] ss:$20 sps:$4 sm:$0xff]   ;;  %v1166_v42 = vld [vmem:[#allocation6 + $0xd0] ss:$20 sps:$4 sm:$0xff]  }
  0x5f   :  { %1033 = vmatpush3.bf16.msra.mxu0 %v1144_v6  ;;  %v1167_v43 = vld [vmem:[#allocation6 + $0xd4] ss:$20 sps:$4 sm:$0xff]   ;;  %v1168_v44 = vld [vmem:[#allocation6 + $0xf8] ss:$20 sps:$4 sm:$0xff]   ;;  %v1169_v45 = vld [vmem:[#allocation6 + $0xfc] ss:$20 sps:$4 sm:$0xff]  }
  0x60   :  { %1053 = vmatpush3.bf16.msra.mxu1 %v1145_v7  ;;  %1034 = vmatprep.subr.bf16.mxu0 %v1343_v3  ;;  %v1170_v46 = vld [vmem:[#allocation6 + $0x120] ss:$20 sps:$4 sm:$0xff]   ;;  %v1171_v47 = vld [vmem:[#allocation6 + $0x124] ss:$20 sps:$4 sm:$0xff]   ;;  %v1175_v51 = vld [vmem:[#allocation6 + $0x88] ss:$20 sps:$4 sm:$0xff]  }
  0x61   :  { %1054 = vmatprep.subr.bf16.mxu1 %v1343_v3  ;;  %v1172_v48 = vld [vmem:[#allocation6 + $0x10] ss:$20 sps:$4 sm:$0xff]   ;;  %v1173_v49 = vld [vmem:[#allocation6 + $0x38] ss:$20 sps:$4 sm:$0xff]   ;;  %v1174_v50 = vld [vmem:[#allocation6 + $0x60] ss:$20 sps:$4 sm:$0xff]  }
  0x62   :  { %v1176_v52 = vld [vmem:[#allocation6 + $0xb0] ss:$20 sps:$4 sm:$0xff]   ;;  %v1177_v53 = vld [vmem:[#allocation6 + $0xd8] ss:$20 sps:$4 sm:$0xff]   ;;  %v1178_v54 = vld [vmem:[#allocation6 + $0x100] ss:$20 sps:$4 sm:$0xff]  }
  0x63   :  { %1035 = vmatpush3.bf16.msra.mxu0 %v1146_v8  ;;  %v1179_v55 = vld [vmem:[#allocation6 + $0x128] ss:$20 sps:$4 sm:$0xff]   ;;  %v1181_v57 = vld [vmem:[#allocation11] sm:$0xff]   ;;  %v1184_v60 = vld [vmem:[#allocation11 + $0x50] sm:$0xff]   ;;  %s107_s4 = sld [smem:[#allocation8]]  ;;  %s896_s19 = sld [smem:[#allocation8 + $0x1]] }
  0x64   :  { %1055 = vmatpush3.bf16.msra.mxu1 %v1147_v9  ;;  %1036 = vmatprep.subr.bf16.mxu0 %v1343_v3  ;;  %v1182_v58 = vld [vmem:[#allocation11 + $0x48] sm:$0xff]   ;;  %v1185_v61 = vld [vmem:[#allocation11 + $0x10] sm:$0xff]   ;;  %v1186_v62 = vld [vmem:[#allocation11 + $0x58] sm:$0xff]   ;;  %s110_s20 = sld [smem:[#allocation9]]  ;;  %s897_s21 = sld [smem:[#allocation9 + $0x1]] }
  0x65   :  { %1056 = vmatprep.subr.bf16.mxu1 %v1343_v3  ;;  %v1183_v59 = vld [vmem:[#allocation11 + $0x8] sm:$0xff]   ;;  %v1187_v63 = vld [vmem:[#allocation11 + $0x18] sm:$0xff]   ;;  %v1189_v1 = vld [vmem:[#allocation11 + $0x20] sm:$0xff]   ;;  %s898_s23 = sld [smem:[#allocation8 + $0x2]]  ;;  %s900_s2 = sld [smem:[#allocation8 + $0x3]] }
  0x66   :  { %v1190_v2 = vld [vmem:[#allocation11 + $0x68] sm:$0xff]   ;;  %v1192_v4 = vld [vmem:[#allocation11 + $0x70] sm:$0xff]   ;;  %v1194_v6 = vld [vmem:[#allocation11 + $0x78] sm:$0xff]   ;;  %s899_s1 = sld [smem:[#allocation9 + $0x2]]  ;;  %s901_s22 = sld [smem:[#allocation9 + $0x3]] }
  0x67   :  { %1037 = vmatpush3.bf16.msra.mxu0 %v1148_v17  ;;  %v1193_v5 = vld [vmem:[#allocation11 + $0x30] sm:$0xff]   ;;  %v1195_v7 = vld [vmem:[#allocation11 + $0x38] sm:$0xff]   ;;  %s902_s24 = sld [smem:[#allocation8 + $0x4]]  ;;  %s1345_s28 = smov [#allocation12]  }
  0x68   :  { %1057 = vmatpush3.bf16.msra.mxu1 %v1149_v18  ;;  %1038 = vmatprep.subr.bf16.mxu0 %v1343_v3  ;;  %s903_s25 = sld [smem:[#allocation9 + $0x4]]  ;;  %s884_s29 = sshll.u32 %s1345_s28, 4  ;;  %s885_s29 = int_to_ptr.vmem [resolvable:$true] %s884_s29 }
  0x69   :  { %1058 = vmatprep.subr.bf16.mxu1 %v1343_v3  ;;  %v108_v8 = vstv %s107_s4  ;;  %v114_v9 = vstv %s896_s19  ;;  %s1300_s0 = scalar_lea.vmem %s885_s29, 128  ;;  %p1305_p7 = scmp.lt.s32.totalorder %s885_s29, %s885_s29 }
  0x6a   :  { %p1301_p6 = scmp.ne.s32.totalorder %s885_s29, %s1300_s0  ;;  %p1306_p8 = scmp.lt.s32.totalorder %s1300_s0, %s1300_s0 }
  0x6b   :  { %1039 = vmatpush3.bf16.msra.mxu0 %v1150_v19 }
  0x6c   :  { %1059 = vmatpush3.bf16.msra.mxu1 %v1151_v20  ;;  %1040 = vmatprep.subr.bf16.mxu0 %v1343_v3  ;;  %v124_v19 = vstv %s899_s1  ;;  %v128_v20 = vstv %s900_s2  ;;  %p1307_p9 = por %p1306_p8, %p1305_p7 }
  0x6d   :  { %1060 = vmatprep.subr.bf16.mxu1 %v1343_v3 }
  0x6e   :  { %p1308_p10 = pnand %p1307_p9, %p1301_p6 }
  0x6f   :  { %1041 = vmatpush3.bf16.msra.mxu0 %v1152_v21 }
  0x70   :  { %1061 = vmatpush3.bf16.msra.mxu1 %v1153_v22  ;;  %1042 = vmatprep.subr.bf16.mxu0 %v1343_v3 }
  0x71   :  { %1062 = vmatprep.subr.bf16.mxu1 %v1343_v3 }
  0x73   :  { %1043 = vmatpush3.bf16.msra.mxu0 %v1154_v23 }
  0x74   :  { %1063 = vmatpush3.bf16.msra.mxu1 %v1155_v24  ;;  %1068 = vmatprep.subr.bf16.mxu0 %v1343_v3  ;;  %v131_v24 = vstv %s901_s22 }
  0x75   :  { %1088 = vmatprep.subr.bf16.mxu1 %v1343_v3 }
  0xe3   :  { %v91_v12 = vpop.xlane.xlu0 %90 }
  0xe4   :  { %v1433_v13 = vmul.f32 0.125, %v91_v12  ;;  %v111_v12 = vstv %s110_s20 }
  0xe6   :  { %v93_v14 = vsub.f32 %v89_v0, %v1433_v13  ;;  %v1188_v0 = vld [vmem:[#allocation11 + $0x60] sm:$0xff]  }
  0xe8   :  { %v97_v15 = vsel %vm96_vm0, %v93_v14, 0.0  ;;  %v117_v14 = vstv %s897_s21 }
  0xe9   :  { %v98_v16 = vmul.f32 %v97_v15, %v97_v15 }
  0xeb   :  { %99 = vadd.xlane.f32.xlu0 %v98_v16 }
 0x178   :  { %v100_v25 = vpop.xlane.xlu0 %99 }
 0x179   :  { %v101_v26 = vmul.f32 0.125, %v100_v25  ;;  %v135_v25 = vstv %s902_s24 }
 0x17b   :  { %v102_v27 = vadd.f32 1e-05, %v101_v26 }
 0x17d   :  { %1196 = vrsqrt.f32 %v102_v27 }
 0x187   :  { %v1197_v28 = vpop.eup %1196 }
 0x188   :  { %v1448_v29 = vmul.f32 %v1197_v28, %v102_v27  ;;  %v1450_v30 = vmul.f32 %v1197_v28, %v97_v15  ;;  %v121_v15 = vstv %s898_s23 }
 0x18a   :  { %v1454_v33 = vpack.c.bf16 %v1450_v30, %v1450_v30  ;;  %v109_v10 = vmul.f32 %v108_v8, %v1450_v30  ;;  %v115_v11 = vmul.f32 %v114_v9, %v1450_v30  ;;  %v122_v18 = vmul.f32 %v121_v15, %v1450_v30 }
 0x18b   :  { %v129_v23 = vmul.f32 %v128_v20, %v1450_v30  ;;  %v136_v28 = vmul.f32 %v135_v25, %v1450_v30 }
 0x18c   :  { %1045 = vmatmul.mubr.bf16.vlgmr.msra.gmra.mrb[0].mxu0 %v1454_v33  ;;  %1065 = vmatmul.mubr.bf16.vlgmr.msra.gmra.mrb[0].mxu1 %v1454_v33  ;;  %v112_v16 = vadd.f32 %v111_v12, %v109_v10  ;;  %v118_v17 = vadd.f32 %v117_v14, %v115_v11  ;;  %v125_v22 = vadd.f32 %v124_v19, %v122_v18 }
 0x18d   :  { %1069 = vmatpush3.bf16.msra.mxu0 %v1156_v31  ;;  %1089 = vmatpush3.bf16.msra.mxu1 %v1157_v32  ;;  %v132_v27 = vadd.f32 %v131_v24, %v129_v23  ;;  %v138_v31 = vstv %s903_s25 }
 0x18e   :  { %1070 = vmatprep.subr.bf16.mxu0 %v1343_v3  ;;  %1090 = vmatprep.subr.bf16.mxu1 %v1343_v3  ;;  %v119_v21 = vmax.f32 %v112_v16, %v118_v17 }
 0x18f   :  { %1084 = vmatprep.mubr.msk.bf16.mxu0 %vm1344_vm1, %v1343_v3  ;;  %1104 = vmatprep.mubr.msk.bf16.mxu1 %vm1344_vm1, %v1343_v3 }
 0x190   :  { %v126_v26 = vmax.f32 %v119_v21, %v125_v22 }
 0x191   :  { %1071 = vmatpush3.bf16.msra.mxu0 %v1158_v34  ;;  %1091 = vmatpush3.bf16.msra.mxu1 %v1159_v35 }
 0x192   :  { %1072 = vmatprep.subr.bf16.mxu0 %v1343_v3  ;;  %1092 = vmatprep.subr.bf16.mxu1 %v1343_v3  ;;  %v133_v32 = vmax.f32 %v126_v26, %v132_v27 }
 0x195   :  { %1073 = vmatpush3.bf16.msra.mxu0 %v1160_v36  ;;  %1093 = vmatpush3.bf16.msra.mxu1 %v1161_v37 }
 0x196   :  { %1074 = vmatprep.subr.bf16.mxu0 %v1343_v3  ;;  %1094 = vmatprep.subr.bf16.mxu1 %v1343_v3 }
 0x199   :  { %1075 = vmatpush3.bf16.msra.mxu0 %v1162_v38  ;;  %1095 = vmatpush3.bf16.msra.mxu1 %v1163_v39 }
 0x19a   :  { %1076 = vmatprep.subr.bf16.mxu0 %v1343_v3  ;;  %1096 = vmatprep.subr.bf16.mxu1 %v1343_v3 }
 0x19d   :  { %1077 = vmatpush3.bf16.msra.mxu0 %v1164_v40  ;;  %1097 = vmatpush3.bf16.msra.mxu1 %v1165_v41 }
 0x19e   :  { %1078 = vmatprep.subr.bf16.mxu0 %v1343_v3  ;;  %1098 = vmatprep.subr.bf16.mxu1 %v1343_v3 }
 0x1a1   :  { %1079 = vmatpush3.bf16.msra.mxu0 %v1166_v42  ;;  %1099 = vmatpush3.bf16.msra.mxu1 %v1167_v43 }
 0x1a2   :  { %1080 = vmatprep.subr.bf16.mxu0 %v1343_v3  ;;  %1100 = vmatprep.subr.bf16.mxu1 %v1343_v3 }
 0x1a5   :  { %1081 = vmatpush3.bf16.msra.mxu0 %v1168_v44  ;;  %1101 = vmatpush3.bf16.msra.mxu1 %v1169_v45 }
 0x1a6   :  { %1082 = vmatprep.subr.bf16.mxu0 %v1343_v3  ;;  %1102 = vmatprep.subr.bf16.mxu1 %v1343_v3 }
 0x1a9   :  { %1083 = vmatpush3.bf16.msra.mxu0 %v1170_v46  ;;  %1103 = vmatpush3.bf16.msra.mxu1 %v1171_v47 }
 0x1aa   :  { %1108 = vmatprep.subr.bf16.mxu0 %v1343_v3  ;;  %1006 = vmatprep.subr.bf16.mxu1 %v1180_v56 }
 0x1ac   :  { %1085 = vmatmul.mubr.bf16.vlgmr.msra.gmra.mrb[4].mxu0 %v1454_v33  ;;  %1105 = vmatmul.mubr.bf16.vlgmr.msra.gmra.mrb[4].mxu1 %v1454_v33 }
 0x1ad   :  { %1109 = vmatpush3.bf16.msra.mxu0 %v1172_v48  ;;  %1124 = vmatprep.mubr.msk.bf16.mxu0 %vm1344_vm1, %v1343_v3 }
 0x1ae   :  { %1110 = vmatprep.subr.bf16.mxu0 %v1343_v3  ;;  %1007 = vmatpush3.bf16.msra.mxu1 %v1181_v57 }
 0x1af   :  { %1008 = vmatprep.subr.bf16.mxu1 %v1182_v58 }
 0x1b1   :  { %1111 = vmatpush3.bf16.msra.mxu0 %v1173_v49 }
 0x1b2   :  { %1112 = vmatprep.subr.bf16.mxu0 %v1343_v3  ;;  %1009 = vmatpush3.bf16.msra.mxu1 %v1183_v59 }
 0x1b3   :  { %1010 = vmatprep.subr.bf16.mxu1 %v1184_v60 }
 0x1b5   :  { %1113 = vmatpush3.bf16.msra.mxu0 %v1174_v50 }
 0x1b6   :  { %1114 = vmatprep.subr.bf16.mxu0 %v1343_v3  ;;  %1011 = vmatpush3.bf16.msra.mxu1 %v1185_v61 }
 0x1b7   :  { %1012 = vmatprep.subr.bf16.mxu1 %v1186_v62 }
 0x1b9   :  { %1115 = vmatpush3.bf16.msra.mxu0 %v1175_v51 }
 0x1ba   :  { %1116 = vmatprep.subr.bf16.mxu0 %v1343_v3  ;;  %1013 = vmatpush3.bf16.msra.mxu1 %v1187_v63 }
 0x1bb   :  { %1014 = vmatprep.subr.bf16.mxu1 %v1188_v0 }
 0x1bd   :  { %1117 = vmatpush3.bf16.msra.mxu0 %v1176_v52 }
 0x1be   :  { %1118 = vmatprep.subr.bf16.mxu0 %v1343_v3  ;;  %1015 = vmatpush3.bf16.msra.mxu1 %v1189_v1 }
 0x1bf   :  { %1016 = vmatprep.subr.bf16.mxu1 %v1190_v2 }
 0x1c1   :  { %1119 = vmatpush3.bf16.msra.mxu0 %v1177_v53 }
 0x1c2   :  { %1120 = vmatprep.subr.bf16.mxu0 %v1343_v3 }
 0x1c5   :  { %1121 = vmatpush3.bf16.msra.mxu0 %v1178_v54 }
 0x1c6   :  { %1122 = vmatprep.subr.bf16.mxu0 %v1343_v3  ;;  %v1191_v3 = vld [vmem:[#allocation11 + $0x28] sm:$0xff]  }
 0x1c7   :  { %1017 = vmatpush3.bf16.msra.mxu1 %v1191_v3 }
 0x1c8   :  { %1018 = vmatprep.subr.bf16.mxu1 %v1192_v4 }
 0x1c9   :  { %1123 = vmatpush3.bf16.msra.mxu0 %v1179_v55 }
 0x1cb   :  { %1019 = vmatpush3.bf16.msra.mxu1 %v1193_v5 }
 0x1cc   :  { %1125 = vmatmul.mubr.bf16.vlgmr.msra.gmra.mrb[8].mxu0 %v1454_v33  ;;  %1020 = vmatprep.subr.bf16.mxu1 %v1194_v6  ;;  %v139_v33 = vadd.f32 %v138_v31, %v136_v28 }
 0x1ce   :  { %v140_v34 = vmax.f32 %v133_v32, %v139_v33  ;;  %v960_v32 = vld [vmem:[%s1517_s5] ss:$0 sm:$0xff] }
 0x1cf   :  { %1021 = vmatpush3.bf16.msra.mxu1 %v1195_v7 }
 0x1d0   :  { %v245_v35 = vsub.f32 %v112_v16, %v140_v34  ;;  %v355_v36 = vsub.f32 %v118_v17, %v140_v34  ;;  %v465_v52 = vsub.f32 %v125_v22, %v140_v34  ;;  %v575_v53 = vsub.f32 %v132_v27, %v140_v34 }
 0x1d1   :  { %v685_v5 = vsub.f32 %v139_v33, %v140_v34 }
 0x1d2   :  { %v246_v37 = vmul.f32 1.442695, %v245_v35  ;;  %v356_v38 = vmul.f32 1.442695, %v355_v36  ;;  %v466_v54 = vmul.f32 1.442695, %v465_v52 }
 0x1d3   :  { %v576_v55 = vmul.f32 1.442695, %v575_v53  ;;  %v686_v7 = vmul.f32 1.442695, %v685_v5 }
 0x1d4   :  { %1198 = vpow2.f32 %v246_v37 }
 0x1d5   :  { %1200 = vpow2.f32 %v356_v38 }
 0x1d6   :  { %1202 = vpow2.f32 %v466_v54 }
 0x1d7   :  { %1204 = vpow2.f32 %v576_v55 }
 0x1d8   :  { %1206 = vpow2.f32 %v686_v7 }
 0x1de   :  { %v1199_v39 = vpop.eup %1198 }
 0x1df   :  { %v1201_v40 = vpop.eup %1200 }
 0x1e0   :  { %v1203_v56 = vpop.eup %1202  ;;  %v358_v8 = vadd.f32 %v1201_v40, %v1199_v39 }
 0x1e1   :  { %v1205_v62 = vpop.eup %1204 }
 0x1e2   :  { %v468_v9 = vadd.f32 %v1203_v56, %v358_v8  ;;  %v1207_v11 = vpop.eup %1206 }
 0x1e4   :  { %v578_v10 = vadd.f32 %v1205_v62, %v468_v9 }
 0x1e6   :  { %v688_v12 = vadd.f32 %v1207_v11, %v578_v10 }
 0x1e8   :  { %1208 = vrcp.f32 %v688_v12 }
 0x1f2   :  { %v1209_v20 = vpop.eup %1208 }
 0x25f   :  { %v239_v41 = vpop.f32.mrb[0].mxu0  ;;  %v349_v42 = vpop.f32.mrb[0].mxu1 }
 0x260   :  { %v249_v43 = vmul.f32 %v1199_v39, %v239_v41  ;;  %v359_v44 = vmul.f32 %v1201_v40, %v349_v42  ;;  %v1046_v45 = vpop.f32.mrb[1].mxu0  ;;  %v1066_v46 = vpop.f32.mrb[1].mxu1 }
 0x261   :  { %v242_v47 = vpop.f32.mrb[2].mxu0  ;;  %v352_v48 = vpop.f32.mrb[2].mxu1 }
 0x262   :  { %v360_v49 = vadd.f32 %v359_v44, %v249_v43  ;;  %v1047_v50 = vpop.f32.mrb[3].mxu0  ;;  %v1067_v51 = vpop.f32.mrb[3].mxu1 }
 0x27f   :  { %v459_v57 = vpop.f32.mrb[4].mxu0  ;;  %v569_v58 = vpop.f32.mrb[4].mxu1 }
 0x280   :  { %v469_v59 = vmul.f32 %v1203_v56, %v459_v57  ;;  %v1086_v60 = vpop.f32.mrb[5].mxu0  ;;  %v1106_v61 = vpop.f32.mrb[5].mxu1  ;;  %v579_v2 = vmul.f32 %v1205_v62, %v569_v58 }
 0x281   :  { %v462_v63 = vpop.f32.mrb[6].mxu0  ;;  %v572_v0 = vpop.f32.mrb[6].mxu1 }
 0x282   :  { %v470_v1 = vadd.f32 %v469_v59, %v360_v49  ;;  %v1087_v3 = vpop.f32.mrb[7].mxu0  ;;  %v1107_v4 = vpop.f32.mrb[7].mxu1 }
 0x284   :  { %v580_v6 = vadd.f32 %v579_v2, %v470_v1 }
 0x29f   :  { %v679_v14 = vpop.f32.mrb[8].mxu0 }
 0x2a0   :  { %v689_v15 = vmul.f32 %v1207_v11, %v679_v14  ;;  %v1126_v16 = vpop.f32.mrb[9].mxu0 }
 0x2a1   :  { %v682_v17 = vpop.f32.mrb[10].mxu0 }
 0x2a2   :  { %v690_v18 = vadd.f32 %v689_v15, %v580_v6  ;;  %v1127_v19 = vpop.f32.mrb[11].mxu0 }
 0x2a4   :  { %v692_v21 = vmul.f32 %v1209_v20, %v690_v18 }
 0x2a6   :  { %v693_v22 = vsub.f32 %v1450_v30, %v692_v21  ;;  %v694_v24 = vpack.c.bf16 %v692_v21, %v692_v21 }
 0x2a8   :  { %v695_v23 = vpack.c.bf16 %v693_v22, %v693_v22 }
 0x2aa   :  { %856 = vmatprep.mubr.bf16.mxu1 %v695_v23 }
 0x2ab   :  { %857 = vmatmul.mubr.bf16.vlgmr.msra.gmra.mrb[8].mxu1 %v694_v24 }
 0x37e   :  { %v1022_v25 = vpop.f32.mrb[8].mxu1 }
 0x37f   :  { %v1023_v26 = vpop.f32.mrb[9].mxu1 }
 0x380   :  { %v1025_v27 = vpop.f32.mrb[10].mxu1  ;;  %v1024_v28 = vadd.f32 %v1023_v26, %v1022_v25 }
 0x381   :  { %v1026_v31 = vpop.f32.mrb[11].mxu1 }
 0x382   :  { %864 = vadd.xlane.f32.xlu1 %v1024_v28 }
 0x40f   :  { %v865_v33 = vpop.xlane.xlu1 %864 }
 0x410   :  { %v866_v34 = vmul.f32 0.0625, %v865_v33 }
 0x412   :  { %v874_v35 = vadd.f32 %v960_v32, %v866_v34 }
 0x414   :  { %v875_v30 = vmul.f32 %v874_v35, %v1448_v29 }
 0x416   :  { %v876_v36 = vadd.f32 %v875_v30, %v1433_v13 }
 0x418   :  { %877 = vst [vmem:[#allocation12] sm:$0xff] %v876_v36 }
 0x419   :  { %1311 = shalt.err (!%p1308_p10)
}
 0x41a   :  { %s1312_s30 = scalar_lea.hbm %s1518_s6, 128 }
 0x41b   :  { %p1313_p11 = scmp.ne.s32.totalorder %s1518_s6, %s1312_s30  ;;  %p1316_p12 = scmp.lt.u32.totalorder %s1312_s30, %s1518_s6 }
 0x41d   :  { %p1318_p13 = pnand %p1316_p12, %p1313_p11 }
 0x41f   :  { %1321 = shalt.err (!%p1318_p13)
}
 0x420   :  { %887 = dma.vmem_to_hbm [thread:$0]  %s885_s29, 128, %s1518_s6, [#allocation4]  }
 0x421   :  { %1332 = dma.done.wait [#allocation4], 128  }
 0x422   :  { %1333 = vsyncadd [#allocation4], 4294967168 }
 0x423   :  { %891 = vsyncpa [#allocation3], 1 }
 0x424   :  { %892 = vsyncpa [#allocation7], 1 }
 0x425   :  { %893 = vsyncpa [#allocation4], 1 }
 0x426   :  { %894 = vsyncpa [#allocation5], 1 }
 0x427   :  { %895 = vsyncpa [#allocation10], 1 }

</bundles_post_ra>
